<compile_context>
chip_gen: v7x
topology: tpu7x:2x2x1
jax: 0.10.0
libtpu: 0.0.40
codegen_flags: <defaults>
</compile_context>

<pallas_src>
import jax
import jax.numpy as jnp
from jax.experimental import pallas as pl
from jax.experimental.pallas import tpu as pltpu

D_MODEL = 128
NHEAD = 8
DIM_FF = 512
HEAD_DIM = D_MODEL // NHEAD
LN_EPS = 1e-5


def _layer_norm(x, gamma, beta):
    # x: (R, D); gamma/beta: (1, D). Biased variance -> matches PyTorch LayerNorm.
    mean = jnp.mean(x, axis=-1, keepdims=True)
    xc = x - mean
    var = jnp.mean(xc * xc, axis=-1, keepdims=True)
    inv = jax.lax.rsqrt(var + LN_EPS)
    return xc * inv * gamma + beta


def transformer_layer_kernel(
    x_ref,                      # (TB, S, D)  f32
    wqkv_ref, bqkv_ref,         # (D, 3D) bf16, (1, 3D) f32  (1/sqrt(hd) folded into Q part)
    wo_ref, bo_ref,             # (D, D) bf16, (1, D) f32    (un-split output projection)
    w1_ref, b1_ref,             # (D, F) bf16, (1, F) f32
    w2_ref, b2_ref,             # (F, D) bf16, (1, D) f32
    g1_ref, be1_ref,            # (1, D) f32   LayerNorm1 gamma/beta
    g2_ref, be2_ref,            # (1, D) f32   LayerNorm2 gamma/beta
    o_ref,                      # (TB, S, D)  f32
):
    TB, S, D = x_ref.shape
    R = TB * S

    x = x_ref[...].reshape(R, D)                       # (R, D) f32
    xb = x.astype(jnp.bfloat16)

    # ---- fused QKV projection (one lane-dense (R,128)@(128,384) matmul) ----
    qkv = jnp.dot(xb, wqkv_ref[...], preferred_element_type=jnp.float32)
    qkv = (qkv + bqkv_ref[...]).astype(jnp.bfloat16)   # (R, 3D)
    qkv = qkv.reshape(TB, S, 3 * D)

    # 128-lane-aligned split into Q / K / V slabs (no masked relayout).
    q_all = qkv[:, :, 0:D]                             # (TB, S, D) bf16, pre-scaled
    k_all = qkv[:, :, D:2 * D]
    v_all = qkv[:, :, 2 * D:3 * D]

    # ---- multi-head self-attention -----------------------------------------
    # Per-head score/context matmuls (batched over TB); head contexts are collected and
    # lane-concatenated once, then projected with a single full-K (R,128)@(128,128) matmul.
    # TODO(synk): for S >= 256 switch to a flash-style online softmax over KV tiles, and
    # batch the per-head matmuls into one dot_general once Mosaic supports the required
    # leading<->sublane activation transpose cheaply.
    ctx_heads = []
    for h in range(NHEAD):
        lo = h * HEAD_DIM
        hi = lo + HEAD_DIM
        qh = q_all[:, :, lo:hi]                        # (TB, S, hd) bf16
        kh = k_all[:, :, lo:hi]
        vh = v_all[:, :, lo:hi]

        s = jnp.einsum("bqd,bkd->bqk", qh, kh,
                       preferred_element_type=jnp.float32)       # (TB, S, S) f32
        s = s - jnp.max(s, axis=-1, keepdims=True)
        p = jnp.exp(s)
        p = p * pl.reciprocal(jnp.sum(p, axis=-1, keepdims=True), approx=True)
        ctx_h = jnp.einsum("bqk,bkd->bqd", p.astype(jnp.bfloat16), vh,
                           preferred_element_type=jnp.float32)   # (TB, S, hd) f32
        ctx_heads.append(ctx_h.astype(jnp.bfloat16))

    # PyTorch head order: output lanes are [head0(0:16), head1(16:32), ...].
    ctx = jnp.concatenate(ctx_heads, axis=-1).reshape(R, D)      # (R, D) bf16
    attn = jnp.dot(ctx, wo_ref[...], preferred_element_type=jnp.float32) + bo_ref[...]

    # ---- residual + LayerNorm 1 ---------------------------------------------
    x1 = _layer_norm(x + attn, g1_ref[...], be1_ref[...])

    # ---- feed-forward (dropout = identity at inference) ---------------------
    h1 = jnp.dot(x1.astype(jnp.bfloat16), w1_ref[...], preferred_element_type=jnp.float32)
    h1 = jnp.maximum(h1 + b1_ref[...], 0.0)            # ReLU
    h2 = jnp.dot(h1.astype(jnp.bfloat16), w2_ref[...], preferred_element_type=jnp.float32)
    h2 = h2 + b2_ref[...]

    # ---- residual + LayerNorm 2 ---------------------------------------------
    out = _layer_norm(x1 + h2, g2_ref[...], be2_ref[...])
    o_ref[...] = out.reshape(TB, S, D).astype(o_ref.dtype)


def _choose_batch_block(B, S, target_rows=1024):
    """Largest divisor of B with TB*S <= target_rows. Prefer an EVEN grid-step count
    (balanced work across v7x's 2 TensorCores) when that still leaves >=128 matmul rows
    per step; otherwise just take the largest fitting block."""
    divisors = [d for d in range(1, B + 1) if B % d == 0]
    fitting = [d for d in divisors if d * S <= target_rows]
    if not fitting:
        return 1
    tb = max(fitting)
    even_steps = [d for d in fitting if (B // d) % 2 == 0 and d * S >= 128]
    if even_steps:
        tb = max(even_steps)
    return tb


def _pack_params(params):
    """Fuse / transpose / cast parameters once, outside the kernel."""
    scale = 1.0 / (HEAD_DIM ** 0.5)
    # fold the attention scale into the Q projection
    wq = params["wq"] * scale
    bq = params["bq"] * scale
    wqkv = jnp.concatenate([wq, params["wk"], params["wv"]], axis=1).astype(jnp.bfloat16)
    bqkv = jnp.concatenate([bq, params["bk"], params["bv"]])[None, :].astype(jnp.float32)
    wo = params["wo"].astype(jnp.bfloat16)             # (D, D), un-split
    bo = params["bo"][None, :].astype(jnp.float32)
    w1 = params["w1"].astype(jnp.bfloat16)
    b1 = params["b1"][None, :].astype(jnp.float32)
    w2 = params["w2"].astype(jnp.bfloat16)
    b2 = params["b2"][None, :].astype(jnp.float32)
    g1 = params["ln1_g"][None, :].astype(jnp.float32)
    be1 = params["ln1_b"][None, :].astype(jnp.float32)
    g2 = params["ln2_g"][None, :].astype(jnp.float32)
    be2 = params["ln2_b"][None, :].astype(jnp.float32)
    return wqkv, bqkv, wo, bo, w1, b1, w2, b2, g1, be1, g2, be2


def feature_aware_transformer_layer(src, params, *, batch_block=None):
    """src: (B, S, D) float32. params: dict of weights (see init_params)."""
    B, S, D = src.shape
    assert D == D_MODEL and D_MODEL % NHEAD == 0
    F = params["w1"].shape[1]

    TB = _choose_batch_block(B, S) if batch_block is None else batch_block
    assert B % TB == 0, f"batch block {TB} must divide batch {B}"
    grid = (B // TB,)

    packed = _pack_params(params)

    in_specs = [
        pl.BlockSpec((TB, S, D), lambda b: (b, 0, 0)),                 # src block
        pl.BlockSpec((D, 3 * D), lambda b: (0, 0)),                    # wqkv
        pl.BlockSpec((1, 3 * D), lambda b: (0, 0)),                    # bqkv
        pl.BlockSpec((D, D), lambda b: (0, 0)),                        # wo (full)
        pl.BlockSpec((1, D), lambda b: (0, 0)),                        # bo
        pl.BlockSpec((D, F), lambda b: (0, 0)),                        # w1
        pl.BlockSpec((1, F), lambda b: (0, 0)),                        # b1
        pl.BlockSpec((F, D), lambda b: (0, 0)),                        # w2
        pl.BlockSpec((1, D), lambda b: (0, 0)),                        # b2
        pl.BlockSpec((1, D), lambda b: (0, 0)),                        # ln1 gamma
        pl.BlockSpec((1, D), lambda b: (0, 0)),                        # ln1 beta
        pl.BlockSpec((1, D), lambda b: (0, 0)),                        # ln2 gamma
        pl.BlockSpec((1, D), lambda b: (0, 0)),                        # ln2 beta
    ]
    out_spec = pl.BlockSpec((TB, S, D), lambda b: (b, 0, 0))

    # NOTE: activation I/O kept f32 for closest PyTorch parity; casting src/out to bf16 at
    # this boundary (review item for v6e HBM roofline) is a wrapper-only change if desired.
    return pl.pallas_call(
        transformer_layer_kernel,
        out_shape=jax.ShapeDtypeStruct((B, S, D), jnp.float32),
        grid_spec=pltpu.PrefetchScalarGridSpec(
            num_scalar_prefetch=0,
            grid=grid,
            in_specs=in_specs,
            out_specs=out_spec,
        ),
        compiler_params=pltpu.CompilerParams(
            dimension_semantics=("parallel",),
            vmem_limit_bytes=32 * 1024 * 1024,
        ),
    )(src, *packed)


def init_params(key, d_model=D_MODEL, dim_ff=DIM_FF):
    """Deterministic synthetic parameters (shapes match nn.MultiheadAttention /
    nn.Linear / nn.LayerNorm). Weights stored transposed so y = x @ W + b."""
    ks = jax.random.split(key, 8)
    scale = 0.02
    p = {}
    p["wq"] = scale * jax.random.normal(ks[0], (d_model, d_model), jnp.float32)
    p["wk"] = scale * jax.random.normal(ks[1], (d_model, d_model), jnp.float32)
    p["wv"] = scale * jax.random.normal(ks[2], (d_model, d_model), jnp.float32)
    p["bq"] = jnp.zeros((d_model,), jnp.float32)
    p["bk"] = jnp.zeros((d_model,), jnp.float32)
    p["bv"] = jnp.zeros((d_model,), jnp.float32)
    p["wo"] = scale * jax.random.normal(ks[3], (d_model, d_model), jnp.float32)
    p["bo"] = 0.01 * jax.random.normal(ks[4], (d_model,), jnp.float32)
    p["w1"] = scale * jax.random.normal(ks[5], (d_model, dim_ff), jnp.float32)
    p["b1"] = 0.01 * jax.random.normal(ks[6], (dim_ff,), jnp.float32)
    p["w2"] = scale * jax.random.normal(ks[7], (dim_ff, d_model), jnp.float32)
    p["b2"] = jnp.zeros((d_model,), jnp.float32)
    p["ln1_g"] = jnp.ones((d_model,), jnp.float32)
    p["ln1_b"] = jnp.zeros((d_model,), jnp.float32)
    p["ln2_g"] = jnp.ones((d_model,), jnp.float32)
    p["ln2_b"] = jnp.zeros((d_model,), jnp.float32)
    return p


def reference_forward(src, p):
    """Pure-JAX f32 reference mirroring the PyTorch forward (eval mode: dropout = id)."""
    B, S, D = src.shape
    scale = 1.0 / (HEAD_DIM ** 0.5)

    def ln(x, g, b):
        m = jnp.mean(x, -1, keepdims=True)
        v = jnp.mean((x - m) ** 2, -1, keepdims=True)
        return (x - m) / jnp.sqrt(v + LN_EPS) * g + b

    q = src @ p["wq"] + p["bq"]
    k = src @ p["wk"] + p["bk"]
    v = src @ p["wv"] + p["bv"]
    q = q.reshape(B, S, NHEAD, HEAD_DIM).transpose(0, 2, 1, 3)
    k = k.reshape(B, S, NHEAD, HEAD_DIM).transpose(0, 2, 1, 3)
    v = v.reshape(B, S, NHEAD, HEAD_DIM).transpose(0, 2, 1, 3)
    s = jnp.einsum("bhqd,bhkd->bhqk", q, k) * scale
    a = jax.nn.softmax(s, axis=-1)
    o = jnp.einsum("bhqk,bhkd->bhqd", a, v).transpose(0, 2, 1, 3).reshape(B, S, D)
    o = o @ p["wo"] + p["bo"]
    x1 = ln(src + o, p["ln1_g"], p["ln1_b"])
    f = jnp.maximum(x1 @ p["w1"] + p["b1"], 0.0) @ p["w2"] + p["b2"]
    return ln(x1 + f, p["ln2_g"], p["ln2_b"])


if __name__ == "__main__":
    key = jax.random.PRNGKey(0)
    k_x, k_p = jax.random.split(key)

    B, S = 2, 8
    src = jax.random.normal(k_x, (B, S, D_MODEL), jnp.float32)
    params = init_params(k_p)

    out = feature_aware_transformer_layer(src, params)
    out = jax.block_until_ready(out)

    ref = reference_forward(src, params)
    assert out.shape == (B, S, D_MODEL)
    max_err = jnp.max(jnp.abs(out - ref))
    # bf16 matmul operands (f32 accumulation) + approx reciprocal -> relaxed tolerance
    assert jnp.allclose(out, ref, atol=3e-2, rtol=3e-2), f"max abs err {max_err}"

    print("KERNEL_OK")
</pallas_src>

<mosaic_0001>
module attributes {stable_mosaic.version = 11 : i64} {
  func.func @transformer_layer_kernel(%arg0: i32, %arg1: memref<2x8x128xf32, #tpu.memory_space<vmem>>, %arg2: memref<128x384xbf16, #tpu.memory_space<vmem>>, %arg3: memref<1x384xf32, #tpu.memory_space<vmem>>, %arg4: memref<128x128xbf16, #tpu.memory_space<vmem>>, %arg5: memref<1x128xf32, #tpu.memory_space<vmem>>, %arg6: memref<128x512xbf16, #tpu.memory_space<vmem>>, %arg7: memref<1x512xf32, #tpu.memory_space<vmem>>, %arg8: memref<512x128xbf16, #tpu.memory_space<vmem>>, %arg9: memref<1x128xf32, #tpu.memory_space<vmem>>, %arg10: memref<1x128xf32, #tpu.memory_space<vmem>>, %arg11: memref<1x128xf32, #tpu.memory_space<vmem>>, %arg12: memref<1x128xf32, #tpu.memory_space<vmem>>, %arg13: memref<1x128xf32, #tpu.memory_space<vmem>>, %arg14: memref<2x8x128xf32, #tpu.memory_space<vmem>>) attributes {dimension_semantics = [#tpu.dimension_semantics<parallel>], iteration_bounds = array<i64: 1>, scalar_prefetch = 0 : i64, scratch_operands = 0 : i64, tpu.core_type = #tpu.core_type<tc>, window_params = [{transform_indices = @transform_0, window_bounds = array<i64: 2, 8, 128>}, {pipeline_mode = #tpu.pipeline_mode<synchronous>, transform_indices = @transform_1, window_bounds = array<i64: 128, 384>}, {pipeline_mode = #tpu.pipeline_mode<synchronous>, transform_indices = @transform_2, window_bounds = array<i64: 1, 384>}, {pipeline_mode = #tpu.pipeline_mode<synchronous>, transform_indices = @transform_3, window_bounds = array<i64: 128, 128>}, {pipeline_mode = #tpu.pipeline_mode<synchronous>, transform_indices = @transform_4, window_bounds = array<i64: 1, 128>}, {pipeline_mode = #tpu.pipeline_mode<synchronous>, transform_indices = @transform_5, window_bounds = array<i64: 128, 512>}, {pipeline_mode = #tpu.pipeline_mode<synchronous>, transform_indices = @transform_6, window_bounds = array<i64: 1, 512>}, {pipeline_mode = #tpu.pipeline_mode<synchronous>, transform_indices = @transform_7, window_bounds = array<i64: 512, 128>}, {pipeline_mode = #tpu.pipeline_mode<synchronous>, transform_indices = @transform_8, window_bounds = array<i64: 1, 128>}, {pipeline_mode = #tpu.pipeline_mode<synchronous>, transform_indices = @transform_9, window_bounds = array<i64: 1, 128>}, {pipeline_mode = #tpu.pipeline_mode<synchronous>, transform_indices = @transform_10, window_bounds = array<i64: 1, 128>}, {pipeline_mode = #tpu.pipeline_mode<synchronous>, transform_indices = @transform_11, window_bounds = array<i64: 1, 128>}, {pipeline_mode = #tpu.pipeline_mode<synchronous>, transform_indices = @transform_12, window_bounds = array<i64: 1, 128>}, {transform_indices = @transform_13, window_bounds = array<i64: 2, 8, 128>}]} {
    %c0 = arith.constant 0 : index
    %c0_0 = arith.constant 0 : index
    %c0_1 = arith.constant 0 : index
    %0 = vector.load %arg1[%c0, %c0_0, %c0_1] : memref<2x8x128xf32, #tpu.memory_space<vmem>>, vector<2x8x128xf32>
    %1 = vector.shape_cast %0 : vector<2x8x128xf32> to vector<16x128xf32>
    %2 = arith.truncf %1 : vector<16x128xf32> to vector<16x128xbf16>
    %c0_2 = arith.constant 0 : index
    %c0_3 = arith.constant 0 : index
    %3 = vector.load %arg2[%c0_2, %c0_3] : memref<128x384xbf16, #tpu.memory_space<vmem>>, vector<128x384xbf16>
    %cst = arith.constant dense<0.000000e+00> : vector<16x384xf32>
    %4 = tpu.matmul %2, %3, %cst {dimension_numbers = #tpu.dot_dimension_numbers<[1], [0], [0], [1], [0, 0, 1, 1], [], []>} : vector<16x128xbf16>, vector<128x384xbf16>, vector<16x384xf32> -> vector<16x384xf32>
    %c0_4 = arith.constant 0 : index
    %c0_5 = arith.constant 0 : index
    %5 = vector.load %arg3[%c0_4, %c0_5] : memref<1x384xf32, #tpu.memory_space<vmem>>, vector<1x384xf32>
    %6 = vector.broadcast %5 : vector<1x384xf32> to vector<16x384xf32>
    %7 = arith.addf %4, %6 : vector<16x384xf32>
    %8 = arith.truncf %7 : vector<16x384xf32> to vector<16x384xbf16>
    %9 = vector.shape_cast %8 : vector<16x384xbf16> to vector<2x8x384xbf16>
    %10 = vector.extract_strided_slice %9 {offsets = [0, 0, 0], sizes = [2, 8, 128], strides = [1, 1, 1]} : vector<2x8x384xbf16> to vector<2x8x128xbf16>
    %11 = vector.extract_strided_slice %9 {offsets = [0, 0, 128], sizes = [2, 8, 128], strides = [1, 1, 1]} : vector<2x8x384xbf16> to vector<2x8x128xbf16>
    %12 = vector.extract_strided_slice %9 {offsets = [0, 0, 256], sizes = [2, 8, 128], strides = [1, 1, 1]} : vector<2x8x384xbf16> to vector<2x8x128xbf16>
    %13 = vector.extract_strided_slice %10 {offsets = [0, 0, 0], sizes = [2, 8, 16], strides = [1, 1, 1]} : vector<2x8x128xbf16> to vector<2x8x16xbf16>
    %14 = vector.extract_strided_slice %11 {offsets = [0, 0, 0], sizes = [2, 8, 16], strides = [1, 1, 1]} : vector<2x8x128xbf16> to vector<2x8x16xbf16>
    %15 = vector.extract_strided_slice %12 {offsets = [0, 0, 0], sizes = [2, 8, 16], strides = [1, 1, 1]} : vector<2x8x128xbf16> to vector<2x8x16xbf16>
    "tpu.trace_start"() <{level = 10 : i32, message = "bqd,bkd->bqk"}> : () -> ()
    %cst_6 = arith.constant dense<0.000000e+00> : vector<2x8x8xf32>
    %16 = tpu.matmul %13, %14, %cst_6 {dimension_numbers = #tpu.dot_dimension_numbers<[2], [2], [1], [1], [0, 0, 0, 1, 1, 1], [0], [0]>} : vector<2x8x16xbf16>, vector<2x8x16xbf16>, vector<2x8x8xf32> -> vector<2x8x8xf32>
    "tpu.trace_stop"() : () -> ()
    %cst_7 = arith.constant dense<0xFF800000> : vector<2x8xf32>
    %17 = vector.multi_reduction <maximumf>, %16, %cst_7 [2] : vector<2x8x8xf32> to vector<2x8xf32>
    %18 = vector.shape_cast %17 : vector<2x8xf32> to vector<2x8x1xf32>
    %19 = vector.broadcast %18 : vector<2x8x1xf32> to vector<2x8x8xf32>
    %20 = arith.subf %16, %19 : vector<2x8x8xf32>
    %21 = math.exp %20 : vector<2x8x8xf32>
    %cst_8 = arith.constant dense<0.000000e+00> : vector<2x8xf32>
    %22 = vector.multi_reduction <add>, %21, %cst_8 [2] : vector<2x8x8xf32> to vector<2x8xf32>
    %23 = vector.shape_cast %22 : vector<2x8xf32> to vector<2x8x1xf32>
    %24 = tpu.reciprocal %23 {approx = true} : vector<2x8x1xf32> -> vector<2x8x1xf32>
    %25 = vector.broadcast %24 : vector<2x8x1xf32> to vector<2x8x8xf32>
    %26 = arith.mulf %21, %25 : vector<2x8x8xf32>
    %27 = arith.truncf %26 : vector<2x8x8xf32> to vector<2x8x8xbf16>
    "tpu.trace_start"() <{level = 10 : i32, message = "bqk,bkd->bqd"}> : () -> ()
    %cst_9 = arith.constant dense<0.000000e+00> : vector<2x8x16xf32>
    %28 = tpu.matmul %27, %15, %cst_9 {dimension_numbers = #tpu.dot_dimension_numbers<[2], [1], [1], [2], [0, 0, 0, 1, 1, 2], [0], [0]>} : vector<2x8x8xbf16>, vector<2x8x16xbf16>, vector<2x8x16xf32> -> vector<2x8x16xf32>
    "tpu.trace_stop"() : () -> ()
    %29 = arith.truncf %28 : vector<2x8x16xf32> to vector<2x8x16xbf16>
    %30 = vector.extract_strided_slice %10 {offsets = [0, 0, 16], sizes = [2, 8, 16], strides = [1, 1, 1]} : vector<2x8x128xbf16> to vector<2x8x16xbf16>
    %31 = vector.extract_strided_slice %11 {offsets = [0, 0, 16], sizes = [2, 8, 16], strides = [1, 1, 1]} : vector<2x8x128xbf16> to vector<2x8x16xbf16>
    %32 = vector.extract_strided_slice %12 {offsets = [0, 0, 16], sizes = [2, 8, 16], strides = [1, 1, 1]} : vector<2x8x128xbf16> to vector<2x8x16xbf16>
    "tpu.trace_start"() <{level = 10 : i32, message = "bqd,bkd->bqk"}> : () -> ()
    %cst_10 = arith.constant dense<0.000000e+00> : vector<2x8x8xf32>
    %33 = tpu.matmul %30, %31, %cst_10 {dimension_numbers = #tpu.dot_dimension_numbers<[2], [2], [1], [1], [0, 0, 0, 1, 1, 1], [0], [0]>} : vector<2x8x16xbf16>, vector<2x8x16xbf16>, vector<2x8x8xf32> -> vector<2x8x8xf32>
    "tpu.trace_stop"() : () -> ()
    %cst_11 = arith.constant dense<0xFF800000> : vector<2x8xf32>
    %34 = vector.multi_reduction <maximumf>, %33, %cst_11 [2] : vector<2x8x8xf32> to vector<2x8xf32>
    %35 = vector.shape_cast %34 : vector<2x8xf32> to vector<2x8x1xf32>
    %36 = vector.broadcast %35 : vector<2x8x1xf32> to vector<2x8x8xf32>
    %37 = arith.subf %33, %36 : vector<2x8x8xf32>
    %38 = math.exp %37 : vector<2x8x8xf32>
    %cst_12 = arith.constant dense<0.000000e+00> : vector<2x8xf32>
    %39 = vector.multi_reduction <add>, %38, %cst_12 [2] : vector<2x8x8xf32> to vector<2x8xf32>
    %40 = vector.shape_cast %39 : vector<2x8xf32> to vector<2x8x1xf32>
    %41 = tpu.reciprocal %40 {approx = true} : vector<2x8x1xf32> -> vector<2x8x1xf32>
    %42 = vector.broadcast %41 : vector<2x8x1xf32> to vector<2x8x8xf32>
    %43 = arith.mulf %38, %42 : vector<2x8x8xf32>
    %44 = arith.truncf %43 : vector<2x8x8xf32> to vector<2x8x8xbf16>
    "tpu.trace_start"() <{level = 10 : i32, message = "bqk,bkd->bqd"}> : () -> ()
    %cst_13 = arith.constant dense<0.000000e+00> : vector<2x8x16xf32>
    %45 = tpu.matmul %44, %32, %cst_13 {dimension_numbers = #tpu.dot_dimension_numbers<[2], [1], [1], [2], [0, 0, 0, 1, 1, 2], [0], [0]>} : vector<2x8x8xbf16>, vector<2x8x16xbf16>, vector<2x8x16xf32> -> vector<2x8x16xf32>
    "tpu.trace_stop"() : () -> ()
    %46 = arith.truncf %45 : vector<2x8x16xf32> to vector<2x8x16xbf16>
    %47 = vector.extract_strided_slice %10 {offsets = [0, 0, 32], sizes = [2, 8, 16], strides = [1, 1, 1]} : vector<2x8x128xbf16> to vector<2x8x16xbf16>
    %48 = vector.extract_strided_slice %11 {offsets = [0, 0, 32], sizes = [2, 8, 16], strides = [1, 1, 1]} : vector<2x8x128xbf16> to vector<2x8x16xbf16>
    %49 = vector.extract_strided_slice %12 {offsets = [0, 0, 32], sizes = [2, 8, 16], strides = [1, 1, 1]} : vector<2x8x128xbf16> to vector<2x8x16xbf16>
    "tpu.trace_start"() <{level = 10 : i32, message = "bqd,bkd->bqk"}> : () -> ()
    %cst_14 = arith.constant dense<0.000000e+00> : vector<2x8x8xf32>
    %50 = tpu.matmul %47, %48, %cst_14 {dimension_numbers = #tpu.dot_dimension_numbers<[2], [2], [1], [1], [0, 0, 0, 1, 1, 1], [0], [0]>} : vector<2x8x16xbf16>, vector<2x8x16xbf16>, vector<2x8x8xf32> -> vector<2x8x8xf32>
    "tpu.trace_stop"() : () -> ()
    %cst_15 = arith.constant dense<0xFF800000> : vector<2x8xf32>
    %51 = vector.multi_reduction <maximumf>, %50, %cst_15 [2] : vector<2x8x8xf32> to vector<2x8xf32>
    %52 = vector.shape_cast %51 : vector<2x8xf32> to vector<2x8x1xf32>
    %53 = vector.broadcast %52 : vector<2x8x1xf32> to vector<2x8x8xf32>
    %54 = arith.subf %50, %53 : vector<2x8x8xf32>
    %55 = math.exp %54 : vector<2x8x8xf32>
    %cst_16 = arith.constant dense<0.000000e+00> : vector<2x8xf32>
    %56 = vector.multi_reduction <add>, %55, %cst_16 [2] : vector<2x8x8xf32> to vector<2x8xf32>
    %57 = vector.shape_cast %56 : vector<2x8xf32> to vector<2x8x1xf32>
    %58 = tpu.reciprocal %57 {approx = true} : vector<2x8x1xf32> -> vector<2x8x1xf32>
    %59 = vector.broadcast %58 : vector<2x8x1xf32> to vector<2x8x8xf32>
    %60 = arith.mulf %55, %59 : vector<2x8x8xf32>
    %61 = arith.truncf %60 : vector<2x8x8xf32> to vector<2x8x8xbf16>
    "tpu.trace_start"() <{level = 10 : i32, message = "bqk,bkd->bqd"}> : () -> ()
    %cst_17 = arith.constant dense<0.000000e+00> : vector<2x8x16xf32>
    %62 = tpu.matmul %61, %49, %cst_17 {dimension_numbers = #tpu.dot_dimension_numbers<[2], [1], [1], [2], [0, 0, 0, 1, 1, 2], [0], [0]>} : vector<2x8x8xbf16>, vector<2x8x16xbf16>, vector<2x8x16xf32> -> vector<2x8x16xf32>
    "tpu.trace_stop"() : () -> ()
    %63 = arith.truncf %62 : vector<2x8x16xf32> to vector<2x8x16xbf16>
    %64 = vector.extract_strided_slice %10 {offsets = [0, 0, 48], sizes = [2, 8, 16], strides = [1, 1, 1]} : vector<2x8x128xbf16> to vector<2x8x16xbf16>
    %65 = vector.extract_strided_slice %11 {offsets = [0, 0, 48], sizes = [2, 8, 16], strides = [1, 1, 1]} : vector<2x8x128xbf16> to vector<2x8x16xbf16>
    %66 = vector.extract_strided_slice %12 {offsets = [0, 0, 48], sizes = [2, 8, 16], strides = [1, 1, 1]} : vector<2x8x128xbf16> to vector<2x8x16xbf16>
    "tpu.trace_start"() <{level = 10 : i32, message = "bqd,bkd->bqk"}> : () -> ()
    %cst_18 = arith.constant dense<0.000000e+00> : vector<2x8x8xf32>
    %67 = tpu.matmul %64, %65, %cst_18 {dimension_numbers = #tpu.dot_dimension_numbers<[2], [2], [1], [1], [0, 0, 0, 1, 1, 1], [0], [0]>} : vector<2x8x16xbf16>, vector<2x8x16xbf16>, vector<2x8x8xf32> -> vector<2x8x8xf32>
    "tpu.trace_stop"() : () -> ()
    %cst_19 = arith.constant dense<0xFF800000> : vector<2x8xf32>
    %68 = vector.multi_reduction <maximumf>, %67, %cst_19 [2] : vector<2x8x8xf32> to vector<2x8xf32>
    %69 = vector.shape_cast %68 : vector<2x8xf32> to vector<2x8x1xf32>
    %70 = vector.broadcast %69 : vector<2x8x1xf32> to vector<2x8x8xf32>
    %71 = arith.subf %67, %70 : vector<2x8x8xf32>
    %72 = math.exp %71 : vector<2x8x8xf32>
    %cst_20 = arith.constant dense<0.000000e+00> : vector<2x8xf32>
    %73 = vector.multi_reduction <add>, %72, %cst_20 [2] : vector<2x8x8xf32> to vector<2x8xf32>
    %74 = vector.shape_cast %73 : vector<2x8xf32> to vector<2x8x1xf32>
    %75 = tpu.reciprocal %74 {approx = true} : vector<2x8x1xf32> -> vector<2x8x1xf32>
    %76 = vector.broadcast %75 : vector<2x8x1xf32> to vector<2x8x8xf32>
    %77 = arith.mulf %72, %76 : vector<2x8x8xf32>
    %78 = arith.truncf %77 : vector<2x8x8xf32> to vector<2x8x8xbf16>
    "tpu.trace_start"() <{level = 10 : i32, message = "bqk,bkd->bqd"}> : () -> ()
    %cst_21 = arith.constant dense<0.000000e+00> : vector<2x8x16xf32>
    %79 = tpu.matmul %78, %66, %cst_21 {dimension_numbers = #tpu.dot_dimension_numbers<[2], [1], [1], [2], [0, 0, 0, 1, 1, 2], [0], [0]>} : vector<2x8x8xbf16>, vector<2x8x16xbf16>, vector<2x8x16xf32> -> vector<2x8x16xf32>
    "tpu.trace_stop"() : () -> ()
    %80 = arith.truncf %79 : vector<2x8x16xf32> to vector<2x8x16xbf16>
    %81 = vector.extract_strided_slice %10 {offsets = [0, 0, 64], sizes = [2, 8, 16], strides = [1, 1, 1]} : vector<2x8x128xbf16> to vector<2x8x16xbf16>
    %82 = vector.extract_strided_slice %11 {offsets = [0, 0, 64], sizes = [2, 8, 16], strides = [1, 1, 1]} : vector<2x8x128xbf16> to vector<2x8x16xbf16>
    %83 = vector.extract_strided_slice %12 {offsets = [0, 0, 64], sizes = [2, 8, 16], strides = [1, 1, 1]} : vector<2x8x128xbf16> to vector<2x8x16xbf16>
    "tpu.trace_start"() <{level = 10 : i32, message = "bqd,bkd->bqk"}> : () -> ()
    %cst_22 = arith.constant dense<0.000000e+00> : vector<2x8x8xf32>
    %84 = tpu.matmul %81, %82, %cst_22 {dimension_numbers = #tpu.dot_dimension_numbers<[2], [2], [1], [1], [0, 0, 0, 1, 1, 1], [0], [0]>} : vector<2x8x16xbf16>, vector<2x8x16xbf16>, vector<2x8x8xf32> -> vector<2x8x8xf32>
    "tpu.trace_stop"() : () -> ()
    %cst_23 = arith.constant dense<0xFF800000> : vector<2x8xf32>
    %85 = vector.multi_reduction <maximumf>, %84, %cst_23 [2] : vector<2x8x8xf32> to vector<2x8xf32>
    %86 = vector.shape_cast %85 : vector<2x8xf32> to vector<2x8x1xf32>
    %87 = vector.broadcast %86 : vector<2x8x1xf32> to vector<2x8x8xf32>
    %88 = arith.subf %84, %87 : vector<2x8x8xf32>
    %89 = math.exp %88 : vector<2x8x8xf32>
    %cst_24 = arith.constant dense<0.000000e+00> : vector<2x8xf32>
    %90 = vector.multi_reduction <add>, %89, %cst_24 [2] : vector<2x8x8xf32> to vector<2x8xf32>
    %91 = vector.shape_cast %90 : vector<2x8xf32> to vector<2x8x1xf32>
    %92 = tpu.reciprocal %91 {approx = true} : vector<2x8x1xf32> -> vector<2x8x1xf32>
    %93 = vector.broadcast %92 : vector<2x8x1xf32> to vector<2x8x8xf32>
    %94 = arith.mulf %89, %93 : vector<2x8x8xf32>
    %95 = arith.truncf %94 : vector<2x8x8xf32> to vector<2x8x8xbf16>
    "tpu.trace_start"() <{level = 10 : i32, message = "bqk,bkd->bqd"}> : () -> ()
    %cst_25 = arith.constant dense<0.000000e+00> : vector<2x8x16xf32>
    %96 = tpu.matmul %95, %83, %cst_25 {dimension_numbers = #tpu.dot_dimension_numbers<[2], [1], [1], [2], [0, 0, 0, 1, 1, 2], [0], [0]>} : vector<2x8x8xbf16>, vector<2x8x16xbf16>, vector<2x8x16xf32> -> vector<2x8x16xf32>
    "tpu.trace_stop"() : () -> ()
    %97 = arith.truncf %96 : vector<2x8x16xf32> to vector<2x8x16xbf16>
    %98 = vector.extract_strided_slice %10 {offsets = [0, 0, 80], sizes = [2, 8, 16], strides = [1, 1, 1]} : vector<2x8x128xbf16> to vector<2x8x16xbf16>
    %99 = vector.extract_strided_slice %11 {offsets = [0, 0, 80], sizes = [2, 8, 16], strides = [1, 1, 1]} : vector<2x8x128xbf16> to vector<2x8x16xbf16>
    %100 = vector.extract_strided_slice %12 {offsets = [0, 0, 80], sizes = [2, 8, 16], strides = [1, 1, 1]} : vector<2x8x128xbf16> to vector<2x8x16xbf16>
    "tpu.trace_start"() <{level = 10 : i32, message = "bqd,bkd->bqk"}> : () -> ()
    %cst_26 = arith.constant dense<0.000000e+00> : vector<2x8x8xf32>
    %101 = tpu.matmul %98, %99, %cst_26 {dimension_numbers = #tpu.dot_dimension_numbers<[2], [2], [1], [1], [0, 0, 0, 1, 1, 1], [0], [0]>} : vector<2x8x16xbf16>, vector<2x8x16xbf16>, vector<2x8x8xf32> -> vector<2x8x8xf32>
    "tpu.trace_stop"() : () -> ()
    %cst_27 = arith.constant dense<0xFF800000> : vector<2x8xf32>
    %102 = vector.multi_reduction <maximumf>, %101, %cst_27 [2] : vector<2x8x8xf32> to vector<2x8xf32>
    %103 = vector.shape_cast %102 : vector<2x8xf32> to vector<2x8x1xf32>
    %104 = vector.broadcast %103 : vector<2x8x1xf32> to vector<2x8x8xf32>
    %105 = arith.subf %101, %104 : vector<2x8x8xf32>
    %106 = math.exp %105 : vector<2x8x8xf32>
    %cst_28 = arith.constant dense<0.000000e+00> : vector<2x8xf32>
    %107 = vector.multi_reduction <add>, %106, %cst_28 [2] : vector<2x8x8xf32> to vector<2x8xf32>
    %108 = vector.shape_cast %107 : vector<2x8xf32> to vector<2x8x1xf32>
    %109 = tpu.reciprocal %108 {approx = true} : vector<2x8x1xf32> -> vector<2x8x1xf32>
    %110 = vector.broadcast %109 : vector<2x8x1xf32> to vector<2x8x8xf32>
    %111 = arith.mulf %106, %110 : vector<2x8x8xf32>
    %112 = arith.truncf %111 : vector<2x8x8xf32> to vector<2x8x8xbf16>
    "tpu.trace_start"() <{level = 10 : i32, message = "bqk,bkd->bqd"}> : () -> ()
    %cst_29 = arith.constant dense<0.000000e+00> : vector<2x8x16xf32>
    %113 = tpu.matmul %112, %100, %cst_29 {dimension_numbers = #tpu.dot_dimension_numbers<[2], [1], [1], [2], [0, 0, 0, 1, 1, 2], [0], [0]>} : vector<2x8x8xbf16>, vector<2x8x16xbf16>, vector<2x8x16xf32> -> vector<2x8x16xf32>
    "tpu.trace_stop"() : () -> ()
    %114 = arith.truncf %113 : vector<2x8x16xf32> to vector<2x8x16xbf16>
    %115 = vector.extract_strided_slice %10 {offsets = [0, 0, 96], sizes = [2, 8, 16], strides = [1, 1, 1]} : vector<2x8x128xbf16> to vector<2x8x16xbf16>
    %116 = vector.extract_strided_slice %11 {offsets = [0, 0, 96], sizes = [2, 8, 16], strides = [1, 1, 1]} : vector<2x8x128xbf16> to vector<2x8x16xbf16>
    %117 = vector.extract_strided_slice %12 {offsets = [0, 0, 96], sizes = [2, 8, 16], strides = [1, 1, 1]} : vector<2x8x128xbf16> to vector<2x8x16xbf16>
    "tpu.trace_start"() <{level = 10 : i32, message = "bqd,bkd->bqk"}> : () -> ()
    %cst_30 = arith.constant dense<0.000000e+00> : vector<2x8x8xf32>
    %118 = tpu.matmul %115, %116, %cst_30 {dimension_numbers = #tpu.dot_dimension_numbers<[2], [2], [1], [1], [0, 0, 0, 1, 1, 1], [0], [0]>} : vector<2x8x16xbf16>, vector<2x8x16xbf16>, vector<2x8x8xf32> -> vector<2x8x8xf32>
    "tpu.trace_stop"() : () -> ()
    %cst_31 = arith.constant dense<0xFF800000> : vector<2x8xf32>
    %119 = vector.multi_reduction <maximumf>, %118, %cst_31 [2] : vector<2x8x8xf32> to vector<2x8xf32>
    %120 = vector.shape_cast %119 : vector<2x8xf32> to vector<2x8x1xf32>
    %121 = vector.broadcast %120 : vector<2x8x1xf32> to vector<2x8x8xf32>
    %122 = arith.subf %118, %121 : vector<2x8x8xf32>
    %123 = math.exp %122 : vector<2x8x8xf32>
    %cst_32 = arith.constant dense<0.000000e+00> : vector<2x8xf32>
    %124 = vector.multi_reduction <add>, %123, %cst_32 [2] : vector<2x8x8xf32> to vector<2x8xf32>
    %125 = vector.shape_cast %124 : vector<2x8xf32> to vector<2x8x1xf32>
    %126 = tpu.reciprocal %125 {approx = true} : vector<2x8x1xf32> -> vector<2x8x1xf32>
    %127 = vector.broadcast %126 : vector<2x8x1xf32> to vector<2x8x8xf32>
    %128 = arith.mulf %123, %127 : vector<2x8x8xf32>
    %129 = arith.truncf %128 : vector<2x8x8xf32> to vector<2x8x8xbf16>
    "tpu.trace_start"() <{level = 10 : i32, message = "bqk,bkd->bqd"}> : () -> ()
    %cst_33 = arith.constant dense<0.000000e+00> : vector<2x8x16xf32>
    %130 = tpu.matmul %129, %117, %cst_33 {dimension_numbers = #tpu.dot_dimension_numbers<[2], [1], [1], [2], [0, 0, 0, 1, 1, 2], [0], [0]>} : vector<2x8x8xbf16>, vector<2x8x16xbf16>, vector<2x8x16xf32> -> vector<2x8x16xf32>
    "tpu.trace_stop"() : () -> ()
    %131 = arith.truncf %130 : vector<2x8x16xf32> to vector<2x8x16xbf16>
    %132 = vector.extract_strided_slice %10 {offsets = [0, 0, 112], sizes = [2, 8, 16], strides = [1, 1, 1]} : vector<2x8x128xbf16> to vector<2x8x16xbf16>
    %133 = vector.extract_strided_slice %11 {offsets = [0, 0, 112], sizes = [2, 8, 16], strides = [1, 1, 1]} : vector<2x8x128xbf16> to vector<2x8x16xbf16>
    %134 = vector.extract_strided_slice %12 {offsets = [0, 0, 112], sizes = [2, 8, 16], strides = [1, 1, 1]} : vector<2x8x128xbf16> to vector<2x8x16xbf16>
    "tpu.trace_start"() <{level = 10 : i32, message = "bqd,bkd->bqk"}> : () -> ()
    %cst_34 = arith.constant dense<0.000000e+00> : vector<2x8x8xf32>
    %135 = tpu.matmul %132, %133, %cst_34 {dimension_numbers = #tpu.dot_dimension_numbers<[2], [2], [1], [1], [0, 0, 0, 1, 1, 1], [0], [0]>} : vector<2x8x16xbf16>, vector<2x8x16xbf16>, vector<2x8x8xf32> -> vector<2x8x8xf32>
    "tpu.trace_stop"() : () -> ()
    %cst_35 = arith.constant dense<0xFF800000> : vector<2x8xf32>
    %136 = vector.multi_reduction <maximumf>, %135, %cst_35 [2] : vector<2x8x8xf32> to vector<2x8xf32>
    %137 = vector.shape_cast %136 : vector<2x8xf32> to vector<2x8x1xf32>
    %138 = vector.broadcast %137 : vector<2x8x1xf32> to vector<2x8x8xf32>
    %139 = arith.subf %135, %138 : vector<2x8x8xf32>
    %140 = math.exp %139 : vector<2x8x8xf32>
    %cst_36 = arith.constant dense<0.000000e+00> : vector<2x8xf32>
    %141 = vector.multi_reduction <add>, %140, %cst_36 [2] : vector<2x8x8xf32> to vector<2x8xf32>
    %142 = vector.shape_cast %141 : vector<2x8xf32> to vector<2x8x1xf32>
    %143 = tpu.reciprocal %142 {approx = true} : vector<2x8x1xf32> -> vector<2x8x1xf32>
    %144 = vector.broadcast %143 : vector<2x8x1xf32> to vector<2x8x8xf32>
    %145 = arith.mulf %140, %144 : vector<2x8x8xf32>
    %146 = arith.truncf %145 : vector<2x8x8xf32> to vector<2x8x8xbf16>
    "tpu.trace_start"() <{level = 10 : i32, message = "bqk,bkd->bqd"}> : () -> ()
    %cst_37 = arith.constant dense<0.000000e+00> : vector<2x8x16xf32>
    %147 = tpu.matmul %146, %134, %cst_37 {dimension_numbers = #tpu.dot_dimension_numbers<[2], [1], [1], [2], [0, 0, 0, 1, 1, 2], [0], [0]>} : vector<2x8x8xbf16>, vector<2x8x16xbf16>, vector<2x8x16xf32> -> vector<2x8x16xf32>
    "tpu.trace_stop"() : () -> ()
    %148 = arith.truncf %147 : vector<2x8x16xf32> to vector<2x8x16xbf16>
    %149 = tpu.concatenate %29, %46, %63, %80, %97, %114, %131, %148 in 2 : vector<2x8x16xbf16>, vector<2x8x16xbf16>, vector<2x8x16xbf16>, vector<2x8x16xbf16>, vector<2x8x16xbf16>, vector<2x8x16xbf16>, vector<2x8x16xbf16>, vector<2x8x16xbf16> -> vector<2x8x128xbf16>
    %150 = vector.shape_cast %149 : vector<2x8x128xbf16> to vector<16x128xbf16>
    %c0_38 = arith.constant 0 : index
    %c0_39 = arith.constant 0 : index
    %151 = vector.load %arg4[%c0_38, %c0_39] : memref<128x128xbf16, #tpu.memory_space<vmem>>, vector<128x128xbf16>
    %cst_40 = arith.constant dense<0.000000e+00> : vector<16x128xf32>
    %152 = tpu.matmul %150, %151, %cst_40 {dimension_numbers = #tpu.dot_dimension_numbers<[1], [0], [0], [1], [0, 0, 1, 1], [], []>} : vector<16x128xbf16>, vector<128x128xbf16>, vector<16x128xf32> -> vector<16x128xf32>
    %c0_41 = arith.constant 0 : index
    %c0_42 = arith.constant 0 : index
    %153 = vector.load %arg5[%c0_41, %c0_42] : memref<1x128xf32, #tpu.memory_space<vmem>>, vector<1x128xf32>
    %154 = vector.broadcast %153 : vector<1x128xf32> to vector<16x128xf32>
    %155 = arith.addf %152, %154 : vector<16x128xf32>
    %156 = arith.addf %1, %155 : vector<16x128xf32>
    %c0_43 = arith.constant 0 : index
    %c0_44 = arith.constant 0 : index
    %157 = vector.load %arg10[%c0_43, %c0_44] : memref<1x128xf32, #tpu.memory_space<vmem>>, vector<1x128xf32>
    %c0_45 = arith.constant 0 : index
    %c0_46 = arith.constant 0 : index
    %158 = vector.load %arg11[%c0_45, %c0_46] : memref<1x128xf32, #tpu.memory_space<vmem>>, vector<1x128xf32>
    %cst_47 = arith.constant dense<0.000000e+00> : vector<16xf32>
    %159 = vector.multi_reduction <add>, %156, %cst_47 [1] : vector<16x128xf32> to vector<16xf32>
    %160 = vector.shape_cast %159 : vector<16xf32> to vector<16x1xf32>
    %cst_48 = arith.constant 1.280000e+02 : f32
    %161 = vector.broadcast %cst_48 : f32 to vector<16x1xf32>
    %162 = arith.divf %160, %161 : vector<16x1xf32>
    %163 = vector.broadcast %162 : vector<16x1xf32> to vector<16x128xf32>
    %164 = arith.subf %156, %163 : vector<16x128xf32>
    %165 = arith.mulf %164, %164 : vector<16x128xf32>
    %cst_49 = arith.constant dense<0.000000e+00> : vector<16xf32>
    %166 = vector.multi_reduction <add>, %165, %cst_49 [1] : vector<16x128xf32> to vector<16xf32>
    %167 = vector.shape_cast %166 : vector<16xf32> to vector<16x1xf32>
    %cst_50 = arith.constant 1.280000e+02 : f32
    %168 = vector.broadcast %cst_50 : f32 to vector<16x1xf32>
    %169 = arith.divf %167, %168 : vector<16x1xf32>
    %cst_51 = arith.constant 9.99999974E-6 : f32
    %170 = vector.broadcast %cst_51 : f32 to vector<16x1xf32>
    %171 = arith.addf %169, %170 : vector<16x1xf32>
    %172 = math.rsqrt %171 : vector<16x1xf32>
    %173 = vector.broadcast %172 : vector<16x1xf32> to vector<16x128xf32>
    %174 = arith.mulf %164, %173 : vector<16x128xf32>
    %175 = vector.broadcast %157 : vector<1x128xf32> to vector<16x128xf32>
    %176 = arith.mulf %174, %175 : vector<16x128xf32>
    %177 = vector.broadcast %158 : vector<1x128xf32> to vector<16x128xf32>
    %178 = arith.addf %176, %177 : vector<16x128xf32>
    %179 = arith.truncf %178 : vector<16x128xf32> to vector<16x128xbf16>
    %c0_52 = arith.constant 0 : index
    %c0_53 = arith.constant 0 : index
    %180 = vector.load %arg6[%c0_52, %c0_53] : memref<128x512xbf16, #tpu.memory_space<vmem>>, vector<128x512xbf16>
    %cst_54 = arith.constant dense<0.000000e+00> : vector<16x512xf32>
    %181 = tpu.matmul %179, %180, %cst_54 {dimension_numbers = #tpu.dot_dimension_numbers<[1], [0], [0], [1], [0, 0, 1, 1], [], []>} : vector<16x128xbf16>, vector<128x512xbf16>, vector<16x512xf32> -> vector<16x512xf32>
    %c0_55 = arith.constant 0 : index
    %c0_56 = arith.constant 0 : index
    %182 = vector.load %arg7[%c0_55, %c0_56] : memref<1x512xf32, #tpu.memory_space<vmem>>, vector<1x512xf32>
    %183 = vector.broadcast %182 : vector<1x512xf32> to vector<16x512xf32>
    %184 = arith.addf %181, %183 : vector<16x512xf32>
    %cst_57 = arith.constant 0.000000e+00 : f32
    %185 = vector.broadcast %cst_57 : f32 to vector<16x512xf32>
    %186 = arith.maximumf %184, %185 : vector<16x512xf32>
    %187 = arith.truncf %186 : vector<16x512xf32> to vector<16x512xbf16>
    %c0_58 = arith.constant 0 : index
    %c0_59 = arith.constant 0 : index
    %188 = vector.load %arg8[%c0_58, %c0_59] : memref<512x128xbf16, #tpu.memory_space<vmem>>, vector<512x128xbf16>
    %cst_60 = arith.constant dense<0.000000e+00> : vector<16x128xf32>
    %189 = tpu.matmul %187, %188, %cst_60 {dimension_numbers = #tpu.dot_dimension_numbers<[1], [0], [0], [1], [0, 0, 1, 1], [], []>} : vector<16x512xbf16>, vector<512x128xbf16>, vector<16x128xf32> -> vector<16x128xf32>
    %c0_61 = arith.constant 0 : index
    %c0_62 = arith.constant 0 : index
    %190 = vector.load %arg9[%c0_61, %c0_62] : memref<1x128xf32, #tpu.memory_space<vmem>>, vector<1x128xf32>
    %191 = vector.broadcast %190 : vector<1x128xf32> to vector<16x128xf32>
    %192 = arith.addf %189, %191 : vector<16x128xf32>
    %193 = arith.addf %178, %192 : vector<16x128xf32>
    %c0_63 = arith.constant 0 : index
    %c0_64 = arith.constant 0 : index
    %194 = vector.load %arg12[%c0_63, %c0_64] : memref<1x128xf32, #tpu.memory_space<vmem>>, vector<1x128xf32>
    %c0_65 = arith.constant 0 : index
    %c0_66 = arith.constant 0 : index
    %195 = vector.load %arg13[%c0_65, %c0_66] : memref<1x128xf32, #tpu.memory_space<vmem>>, vector<1x128xf32>
    %cst_67 = arith.constant dense<0.000000e+00> : vector<16xf32>
    %196 = vector.multi_reduction <add>, %193, %cst_67 [1] : vector<16x128xf32> to vector<16xf32>
    %197 = vector.shape_cast %196 : vector<16xf32> to vector<16x1xf32>
    %cst_68 = arith.constant 1.280000e+02 : f32
    %198 = vector.broadcast %cst_68 : f32 to vector<16x1xf32>
    %199 = arith.divf %197, %198 : vector<16x1xf32>
    %200 = vector.broadcast %199 : vector<16x1xf32> to vector<16x128xf32>
    %201 = arith.subf %193, %200 : vector<16x128xf32>
    %202 = arith.mulf %201, %201 : vector<16x128xf32>
    %cst_69 = arith.constant dense<0.000000e+00> : vector<16xf32>
    %203 = vector.multi_reduction <add>, %202, %cst_69 [1] : vector<16x128xf32> to vector<16xf32>
    %204 = vector.shape_cast %203 : vector<16xf32> to vector<16x1xf32>
    %cst_70 = arith.constant 1.280000e+02 : f32
    %205 = vector.broadcast %cst_70 : f32 to vector<16x1xf32>
    %206 = arith.divf %204, %205 : vector<16x1xf32>
    %cst_71 = arith.constant 9.99999974E-6 : f32
    %207 = vector.broadcast %cst_71 : f32 to vector<16x1xf32>
    %208 = arith.addf %206, %207 : vector<16x1xf32>
    %209 = math.rsqrt %208 : vector<16x1xf32>
    %210 = vector.broadcast %209 : vector<16x1xf32> to vector<16x128xf32>
    %211 = arith.mulf %201, %210 : vector<16x128xf32>
    %212 = vector.broadcast %194 : vector<1x128xf32> to vector<16x128xf32>
    %213 = arith.mulf %211, %212 : vector<16x128xf32>
    %214 = vector.broadcast %195 : vector<1x128xf32> to vector<16x128xf32>
    %215 = arith.addf %213, %214 : vector<16x128xf32>
    %216 = vector.shape_cast %215 : vector<16x128xf32> to vector<2x8x128xf32>
    %c0_72 = arith.constant 0 : index
    %c0_73 = arith.constant 0 : index
    %c0_74 = arith.constant 0 : index
    %217 = vector.load %arg14[%c0_72, %c0_73, %c0_74] : memref<2x8x128xf32, #tpu.memory_space<vmem>>, vector<2x8x128xf32>
    tpu.vector_store %arg14[%c0_72, %c0_73, %c0_74], %216 {strides = array<i32>} : memref<2x8x128xf32, #tpu.memory_space<vmem>>, vector<2x8x128xf32>,
    return
  }
  func.func @transform_0(%arg0: i32) -> (i32, i32, i32) {
    %c0_i32 = arith.constant 0 : i32
    %c0_i32_0 = arith.constant 0 : i32
    %c0_i32_1 = arith.constant 0 : i32
    return %arg0, %c0_i32, %c0_i32_0 : i32, i32, i32
  }
  func.func @transform_1(%arg0: i32) -> (i32, i32) {
    %c0_i32 = arith.constant 0 : i32
    %c0_i32_0 = arith.constant 0 : i32
    %c0_i32_1 = arith.constant 0 : i32
    return %c0_i32, %c0_i32_0 : i32, i32
  }
  func.func @transform_2(%arg0: i32) -> (i32, i32) {
    %c0_i32 = arith.constant 0 : i32
    %c0_i32_0 = arith.constant 0 : i32
    %c0_i32_1 = arith.constant 0 : i32
    return %c0_i32, %c0_i32_0 : i32, i32
  }
  func.func @transform_3(%arg0: i32) -> (i32, i32) {
    %c0_i32 = arith.constant 0 : i32
    %c0_i32_0 = arith.constant 0 : i32
    %c0_i32_1 = arith.constant 0 : i32
    return %c0_i32, %c0_i32_0 : i32, i32
  }
  func.func @transform_4(%arg0: i32) -> (i32, i32) {
    %c0_i32 = arith.constant 0 : i32
    %c0_i32_0 = arith.constant 0 : i32
    %c0_i32_1 = arith.constant 0 : i32
    return %c0_i32, %c0_i32_0 : i32, i32
  }
  func.func @transform_5(%arg0: i32) -> (i32, i32) {
    %c0_i32 = arith.constant 0 : i32
    %c0_i32_0 = arith.constant 0 : i32
    %c0_i32_1 = arith.constant 0 : i32
    return %c0_i32, %c0_i32_0 : i32, i32
  }
  func.func @transform_6(%arg0: i32) -> (i32, i32) {
    %c0_i32 = arith.constant 0 : i32
    %c0_i32_0 = arith.constant 0 : i32
    %c0_i32_1 = arith.constant 0 : i32
    return %c0_i32, %c0_i32_0 : i32, i32
  }
  func.func @transform_7(%arg0: i32) -> (i32, i32) {
    %c0_i32 = arith.constant 0 : i32
    %c0_i32_0 = arith.constant 0 : i32
    %c0_i32_1 = arith.constant 0 : i32
    return %c0_i32, %c0_i32_0 : i32, i32
  }
  func.func @transform_8(%arg0: i32) -> (i32, i32) {
    %c0_i32 = arith.constant 0 : i32
    %c0_i32_0 = arith.constant 0 : i32
    %c0_i32_1 = arith.constant 0 : i32
    return %c0_i32, %c0_i32_0 : i32, i32
  }
  func.func @transform_9(%arg0: i32) -> (i32, i32) {
    %c0_i32 = arith.constant 0 : i32
    %c0_i32_0 = arith.constant 0 : i32
    %c0_i32_1 = arith.constant 0 : i32
    return %c0_i32, %c0_i32_0 : i32, i32
  }
  func.func @transform_10(%arg0: i32) -> (i32, i32) {
    %c0_i32 = arith.constant 0 : i32
    %c0_i32_0 = arith.constant 0 : i32
    %c0_i32_1 = arith.constant 0 : i32
    return %c0_i32, %c0_i32_0 : i32, i32
  }
  func.func @transform_11(%arg0: i32) -> (i32, i32) {
    %c0_i32 = arith.constant 0 : i32
    %c0_i32_0 = arith.constant 0 : i32
    %c0_i32_1 = arith.constant 0 : i32
    return %c0_i32, %c0_i32_0 : i32, i32
  }
  func.func @transform_12(%arg0: i32) -> (i32, i32) {
    %c0_i32 = arith.constant 0 : i32
    %c0_i32_0 = arith.constant 0 : i32
    %c0_i32_1 = arith.constant 0 : i32
    return %c0_i32, %c0_i32_0 : i32, i32
  }
  func.func @transform_13(%arg0: i32) -> (i32, i32, i32) {
    %c0_i32 = arith.constant 0 : i32
    %c0_i32_0 = arith.constant 0 : i32
    %c0_i32_1 = arith.constant 0 : i32
    return %arg0, %c0_i32, %c0_i32_0 : i32, i32, i32
  }
}

</mosaic_0001>

<bundles_post_ra>
// kernel: tpu_custom_call.1
= control target key start
LH: loop header
LB: loop body
LE: loop exit
PB: predicated region body
PF: predicated region fallthrough
CT: control target
= control target key end

     0   :  { %18 = vsyncpa [#allocation3], 0  ;;  %s4626_s0 = inlined_call_operand.hbm [shape: f32[2,8,128], index: 0, kind: input, shape index: {}]   ;;  %s4627_s1 = inlined_call_operand.hbm [shape: bf16[128,384], index: 1, kind: input, shape index: {}]   ;;  %s4628_s2 = inlined_call_operand.vmem [shape: f32[1,384], index: 2, kind: input, shape index: {}]   ;;  %s4629_s3 = inlined_call_operand.hbm [shape: bf16[128,128], index: 3, kind: input, shape index: {}]   ;;  %s4630_s4 = inlined_call_operand.vmem [shape: f32[1,128], index: 4, kind: input, shape index: {}]   ;;  %s4631_s5 = inlined_call_operand.hbm [shape: bf16[128,512], index: 5, kind: input, shape index: {}]   ;;  %s4632_s6 = inlined_call_operand.vmem [shape: f32[1,512], index: 6, kind: input, shape index: {}]   ;;  %s4633_s7 = inlined_call_operand.hbm [shape: bf16[512,128], index: 7, kind: input, shape index: {}]   ;;  %s4634_s8 = inlined_call_operand.vmem [shape: f32[1,128], index: 8, kind: input, shape index: {}]   ;;  %s4635_s9 = inlined_call_operand.vmem [shape: f32[1,128], index: 9, kind: input, shape index: {}]   ;;  %s4636_s10 = inlined_call_operand.vmem [shape: f32[1,128], index: 10, kind: input, shape index: {}]   ;;  %s4637_s11 = inlined_call_operand.vmem [shape: f32[1,128], index: 11, kind: input, shape index: {}]   ;;  %s4638_s12 = inlined_call_operand.vmem [shape: f32[1,128], index: 12, kind: input, shape index: {}]   ;;  %s4639_s13 = inlined_call_operand.hbm [shape: f32[2,8,128], index: 13, kind: output, shape index: {}]  }
   0x1   :  { %19 = vsyncpa [#allocation6], 0 }
   0x2   :  { %20 = vsyncpa [#allocation9], 0 }
   0x3   :  { %21 = vsyncpa [#allocation4], 0  ;;  %s4000_s25 = smov [#allocation5]   ;;  %s3860_s29 = scalar_lea.hbm %s4627_s1, 3072 }
   0x4   :  { %s39_s26 = sshll.u32 %s4000_s25, 4  ;;  %p3861_p0 = scmp.ne.s32.totalorder %s4627_s1, %s3860_s29  ;;  %s40_s26 = int_to_ptr.vmem [resolvable:$true] %s39_s26 }
   0x5   :  { %p3864_p1 = scmp.lt.u32.totalorder %s3860_s29, %s4627_s1 }
   0x7   :  { %p3866_p2 = pnand %p3864_p1, %p3861_p0 }
   0x9   :  { %3869 = shalt.err (!%p3866_p2)
}
   0xa   :  { %s3870_s17 = scalar_lea.vmem %s40_s26, 3072  ;;  %p3875_p4 = scmp.lt.s32.totalorder %s40_s26, %s40_s26 }
   0xb   :  { %p3871_p3 = scmp.ne.s32.totalorder %s40_s26, %s3870_s17  ;;  %p3876_p5 = scmp.lt.s32.totalorder %s3870_s17, %s3870_s17 }
   0xd   :  { %p3877_p6 = por %p3876_p5, %p3875_p4 }
   0xf   :  { %p3878_p7 = pnand %p3877_p6, %p3871_p3 }
  0x11   :  { %3881 = shalt.err (!%p3878_p7)
}
  0x12   :  { %s4001_s18 = smov 192   ;;  %s4002_s19 = smov 12  }
  0x13   :  { %45 = dma.hbm_to_vmem [thread:$0]  %s4627_s1, 3072, %s40_s26, [#allocation6], %s4001_s18, %s4001_s18, %s4002_s19  }
  0x14   :  { %s4003_s22 = smov [#allocation8]   ;;  %s3882_s27 = scalar_lea.hbm %s4631_s5, 4096 }
  0x15   :  { %s67_s23 = sshll.u32 %s4003_s22, 4  ;;  %p3883_p8 = scmp.ne.s32.totalorder %s4631_s5, %s3882_s27  ;;  %s68_s23 = int_to_ptr.vmem [resolvable:$true] %s67_s23 }
  0x16   :  { %p3886_p9 = scmp.lt.u32.totalorder %s3882_s27, %s4631_s5 }
  0x18   :  { %p3888_p10 = pnand %p3886_p9, %p3883_p8 }
  0x1a   :  { %3891 = shalt.err (!%p3888_p10)
}
  0x1b   :  { %s3892_s15 = scalar_lea.vmem %s68_s23, 4096  ;;  %p3897_p12 = scmp.lt.s32.totalorder %s68_s23, %s68_s23 }
  0x1c   :  { %p3893_p11 = scmp.ne.s32.totalorder %s68_s23, %s3892_s15  ;;  %p3898_p13 = scmp.lt.s32.totalorder %s3892_s15, %s3892_s15 }
  0x1e   :  { %p3899_p0 = por %p3898_p13, %p3897_p12 }
  0x20   :  { %p3900_p1 = pnand %p3899_p0, %p3893_p11 }
  0x22   :  { %3903 = shalt.err (!%p3900_p1)
}
  0x23   :  { %s4004_s1 = smov 256   ;;  %s4005_s26 = smov 16  }
  0x24   :  { %73 = dma.hbm_to_vmem [thread:$0]  %s4631_s5, 4096, %s68_s23, [#allocation9], %s4004_s1, %s4004_s1, %s4005_s26  }
  0x25   :  { %s4006_s18 = smov [#allocation2]   ;;  %s3904_s22 = scalar_lea.hbm %s4626_s0, 256 }
  0x26   :  { %s27_s19 = sshll.u32 %s4006_s18, 4  ;;  %p3905_p2 = scmp.ne.s32.totalorder %s4626_s0, %s3904_s22  ;;  %s28_s19 = int_to_ptr.vmem [resolvable:$true] %s27_s19 }
  0x27   :  { %p3908_p3 = scmp.lt.u32.totalorder %s3904_s22, %s4626_s0 }
  0x29   :  { %p3910_p4 = pnand %p3908_p3, %p3905_p2 }
  0x2b   :  { %3913 = shalt.err (!%p3910_p4)
}
  0x2c   :  { %s3914_s29 = scalar_lea.vmem %s28_s19, 256  ;;  %p3919_p6 = scmp.lt.s32.totalorder %s28_s19, %s28_s19 }
  0x2d   :  { %p3915_p5 = scmp.ne.s32.totalorder %s28_s19, %s3914_s29  ;;  %p3920_p7 = scmp.lt.s32.totalorder %s3914_s29, %s3914_s29 }
  0x2f   :  { %p3921_p8 = por %p3920_p7, %p3919_p6 }
  0x31   :  { %p3922_p9 = pnand %p3921_p8, %p3915_p5 }
  0x33   :  { %3925 = shalt.err (!%p3922_p9)
}
  0x34   :  { %s4007_s5 = smov 128   ;;  %s4008_s23 = smov 8  }
  0x35   :  { %33 = dma.hbm_to_vmem [thread:$0]  %s4626_s0, 256, %s28_s19, [#allocation3], %s4007_s5, %s4007_s5, %s4008_s23  }
  0x36   :  { %s4009_s15 = smov [#allocation7]   ;;  %s3926_s18 = scalar_lea.hbm %s4629_s3, 1024 }
  0x37   :  { %s53_s1 = sshll.u32 %s4009_s15, 4  ;;  %p3927_p10 = scmp.ne.s32.totalorder %s4629_s3, %s3926_s18  ;;  %s54_s1 = int_to_ptr.vmem [resolvable:$true] %s53_s1 }
  0x38   :  { %p3930_p11 = scmp.lt.u32.totalorder %s3926_s18, %s4629_s3 }
  0x3a   :  { %p3932_p12 = pnand %p3930_p11, %p3927_p10 }
  0x3c   :  { %3935 = shalt.err (!%p3932_p12)
}
  0x3d   :  { %s3936_s25 = scalar_lea.vmem %s54_s1, 1024  ;;  %p3941_p0 = scmp.lt.s32.totalorder %s54_s1, %s54_s1 }
  0x3e   :  { %p3937_p13 = scmp.ne.s32.totalorder %s54_s1, %s3936_s25  ;;  %p3942_p1 = scmp.lt.s32.totalorder %s3936_s25, %s3936_s25 }
  0x40   :  { %p3943_p2 = por %p3942_p1, %p3941_p0 }
  0x42   :  { %p3944_p3 = pnand %p3943_p2, %p3937_p13 }
  0x44   :  { %3947 = shalt.err (!%p3944_p3)
}
  0x45   :  { %s4010_s0 = smov 64   ;;  %s4011_s19 = smov 4  }
  0x46   :  { %59 = dma.hbm_to_vmem [thread:$0]  %s4629_s3, 1024, %s54_s1, [#allocation6], %s4010_s0, %s4010_s0, %s4011_s19  }
  0x47   :  { %s4012_s29 = smov [#allocation10]   ;;  %s3948_s16 = scalar_lea.hbm %s4633_s7, 4096 }
  0x48   :  { %s81_s30 = sshll.u32 %s4012_s29, 4  ;;  %p3949_p4 = scmp.ne.s32.totalorder %s4633_s7, %s3948_s16  ;;  %s82_s30 = int_to_ptr.vmem [resolvable:$true] %s81_s30 }
  0x49   :  { %p3952_p5 = scmp.lt.u32.totalorder %s3948_s16, %s4633_s7 }
  0x4b   :  { %p3954_p6 = pnand %p3952_p5, %p3949_p4 }
  0x4d   :  { %3957 = shalt.err (!%p3954_p6)
}
  0x4e   :  { %s3958_s22 = scalar_lea.vmem %s82_s30, 4096  ;;  %p3963_p8 = scmp.lt.s32.totalorder %s82_s30, %s82_s30 }
  0x4f   :  { %p3959_p7 = scmp.ne.s32.totalorder %s82_s30, %s3958_s22  ;;  %p3964_p9 = scmp.lt.s32.totalorder %s3958_s22, %s3958_s22 }
  0x51   :  { %p3965_p10 = por %p3964_p9, %p3963_p8 }
  0x53   :  { %p3966_p11 = pnand %p3965_p10, %p3959_p7 }
  0x55   :  { %3969 = shalt.err (!%p3966_p11)
}
  0x56   :  { %87 = dma.hbm_to_vmem [thread:$0]  %s4633_s7, 4096, %s82_s30, [#allocation9], %s4010_s0, %s4010_s0, %s4011_s19  }
  0x57   :  { %3992 = dma.done.wait [#allocation3], 256  }
  0x58   :  { %3993 = vsyncadd [#allocation3], 4294967040 }
  0x59   :  { %3994 = dma.done.wait [#allocation6], 4096  }
  0x5a   :  { %3995 = vsyncadd [#allocation6], 4294963200 }
  0x5b   :  { %3996 = dma.done.wait [#allocation9], 8192  }
  0x5c   :  { %3997 = vsyncadd [#allocation9], 4294959104  ;;  %v4013_v0 = vmov 0   ;;  %v4014_v1 = vmov 0.0   ;;  %v3666_v2 = vld [vmem:[#allocation5 + $0x4] ss:$12 sps:$4 sm:$0xff]   ;;  %v151_v29 = vlaneseq }
  0x5d   :  { %326 = vmatprep.mubr.bf16.mxu0 %v4013_v0  ;;  %3412 = vmatprep.subr.bf16.mxu1 %v4014_v1  ;;  %v3668_v3 = vld [vmem:[#allocation5] ss:$12 sps:$4 sm:$0xff]   ;;  %v3669_v4 = vld [vmem:[#allocation5 + $0x1c] ss:$12 sps:$4 sm:$0xff]   ;;  %v3671_v5 = vld [vmem:[#allocation5 + $0x18] ss:$12 sps:$4 sm:$0xff]  }
  0x5e   :  { %294 = vmatprep.subr.bf16.mxu0 %v3666_v2  ;;  %v3672_v6 = vld [vmem:[#allocation5 + $0x34] ss:$12 sps:$4 sm:$0xff]   ;;  %v3674_v7 = vld [vmem:[#allocation5 + $0x30] ss:$12 sps:$4 sm:$0xff]   ;;  %v3675_v8 = vld [vmem:[#allocation5 + $0x4c] ss:$12 sps:$4 sm:$0xff]  }
  0x5f   :  { %295 = vmatpush1.bf16.msra.mxu0 %v3668_v3  ;;  %v3677_v9 = vld [vmem:[#allocation5 + $0x48] ss:$12 sps:$4 sm:$0xff]   ;;  %v3678_v10 = vld [vmem:[#allocation5 + $0x64] ss:$12 sps:$4 sm:$0xff]   ;;  %v3691_v12 = vld [vmem:[#allocation5 + $0x20] ss:$12 sps:$4 sm:$0xff]  }
  0x60   :  { %296 = vmatprep.subr.bf16.mxu0 %v3669_v4  ;;  %v3690_v11 = vld [vmem:[#allocation5 + $0x8] ss:$12 sps:$4 sm:$0xff]   ;;  %v3680_v13 = vld [vmem:[#allocation5 + $0x60] ss:$12 sps:$4 sm:$0xff]   ;;  %v3683_v15 = vld [vmem:[#allocation5 + $0x78] ss:$12 sps:$4 sm:$0xff]  }
  0x61   :  { %3413 = vmatpush3.bf16.msra.mxu1 %v3690_v11  ;;  %v3681_v14 = vld [vmem:[#allocation5 + $0x7c] ss:$12 sps:$4 sm:$0xff]   ;;  %v3684_v16 = vld [vmem:[#allocation5 + $0x94] ss:$12 sps:$4 sm:$0xff]   ;;  %v3692_v17 = vld [vmem:[#allocation5 + $0x38] ss:$12 sps:$4 sm:$0xff]  }
  0x62   :  { %3414 = vmatprep.subr.bf16.mxu1 %v4014_v1  ;;  %v3693_v18 = vld [vmem:[#allocation5 + $0x50] ss:$12 sps:$4 sm:$0xff]   ;;  %v3687_v20 = vld [vmem:[#allocation5 + $0xac] ss:$12 sps:$4 sm:$0xff]   ;;  %v3694_v21 = vld [vmem:[#allocation5 + $0x68] ss:$12 sps:$4 sm:$0xff]  }
  0x63   :  { %297 = vmatpush1.bf16.msra.mxu0 %v3671_v5  ;;  %v3686_v19 = vld [vmem:[#allocation5 + $0x90] ss:$12 sps:$4 sm:$0xff]   ;;  %v3689_v22 = vld [vmem:[#allocation5 + $0xa8] ss:$12 sps:$4 sm:$0xff]   ;;  %v3695_v25 = vld [vmem:[#allocation5 + $0x80] ss:$12 sps:$4 sm:$0xff]  }
  0x64   :  { %298 = vmatprep.subr.bf16.mxu0 %v3672_v6  ;;  %v114_v23 = vld [vmem:[#allocation2] sm:$0xff]  ;;  %v115_v24 = vld [vmem:[#allocation2 + $0x8] sm:$0xff]  ;;  %vm4015_vm0 = vmmov 0   ;;  %v4177_v30 = vshrl.u32 %v151_v29, 7  ;;  %vm395_vm1 = vcmask 130048   ;;  %vm517_vm2 = vcmask 1043456  }
  0x65   :  { %3415 = vmatpush3.bf16.msra.mxu1 %v3691_v12  ;;  %v116_v26 = vpack.c.bf16 %v115_v24, %v114_v23  ;;  %v3696_v27 = vld [vmem:[#allocation5 + $0x98] ss:$12 sps:$4 sm:$0xff]   ;;  %v3697_v28 = vld [vmem:[#allocation5 + $0xb0] ss:$12 sps:$4 sm:$0xff]   ;;  %3428 = vmatprep.mubr.msk.bf16.mxu1 %vm4015_vm0, %v4014_v1  ;;  %vm489_vm3 = vcmask 64512   ;;  %s4017_s25 = smov 96  }
  0x66   :  { %3416 = vmatprep.subr.bf16.mxu1 %v4014_v1  ;;  %v153_v31 = vsub.s32 0, %v4177_v30  ;;  %v149_v32 = vld [vmem:[%s4628_s2] sm:$0x7]  ;;  %v157_v33 = vsub.s32 1, %v4177_v30  ;;  %v161_v50 = vsub.s32 2, %v4177_v30  ;;  %s4016_s2 = smov 112  }
  0x67   :  { %299 = vmatpush1.bf16.msra.mxu0 %v3674_v7  ;;  %s4018_s19 = smov 80   ;;  %s4019_s27 = smov 48   ;;  %vm2227_vm4 = vcmask 261120   ;;  %vm2232_vm5 = vcmask 392192   ;;  %vm2237_vm6 = vcmask 523264   ;;  %vm2242_vm7 = vcmask 654336  }
  0x68   :  { %300 = vmatprep.subr.bf16.mxu0 %v3675_v8  ;;  %v154_v34 = vrot.slane %v149_v32, %v153_v31  ;;  %v158_v35 = vrot.slane %v149_v32, %v157_v33  ;;  %v162_v51 = vrot.slane %v149_v32, %v161_v50  ;;  %s4020_s28 = smov 32   ;;  %vm2247_vm8 = vcmask 785408   ;;  %s4021_s20 = smov [#allocation11]  }
  0x69   :  { %3417 = vmatpush3.bf16.msra.mxu1 %v3692_v17  ;;  %vm2252_vm9 = vcmask 916480   ;;  %s3125_s21 = sshll.u32 %s4021_s20, 4  ;;  %s3126_s21 = int_to_ptr.vmem [resolvable:$true] %s3125_s21 }
  0x6a   :  { %3418 = vmatprep.subr.bf16.mxu1 %v4014_v1  ;;  %s3970_s22 = scalar_lea.vmem %s3126_s21, 256  ;;  %p3975_p13 = scmp.lt.s32.totalorder %s3126_s21, %s3126_s21 }
  0x6b   :  { %301 = vmatpush1.bf16.msra.mxu0 %v3677_v9  ;;  %p3971_p12 = scmp.ne.s32.totalorder %s3126_s21, %s3970_s22  ;;  %p3976_p0 = scmp.lt.s32.totalorder %s3970_s22, %s3970_s22 }
  0x6c   :  { %302 = vmatprep.subr.bf16.mxu0 %v3678_v10 }
  0x6d   :  { %3419 = vmatpush3.bf16.msra.mxu1 %v3693_v18  ;;  %p3977_p1 = por %p3976_p0, %p3975_p13 }
  0x6e   :  { %3420 = vmatprep.subr.bf16.mxu1 %v4014_v1 }
  0x6f   :  { %303 = vmatpush1.bf16.msra.mxu0 %v3680_v13  ;;  %p3978_p2 = pnand %p3977_p1, %p3971_p12 }
  0x70   :  { %304 = vmatprep.subr.bf16.mxu0 %v3681_v14 }
  0x71   :  { %3421 = vmatpush3.bf16.msra.mxu1 %v3694_v21 }
  0x72   :  { %3422 = vmatprep.subr.bf16.mxu1 %v4014_v1 }
  0x73   :  { %305 = vmatpush1.bf16.msra.mxu0 %v3683_v15 }
  0x74   :  { %306 = vmatprep.subr.bf16.mxu0 %v3684_v16 }
  0x75   :  { %3423 = vmatpush3.bf16.msra.mxu1 %v3695_v25 }
  0x76   :  { %3424 = vmatprep.subr.bf16.mxu1 %v4014_v1 }
  0x77   :  { %307 = vmatpush1.bf16.msra.mxu0 %v3686_v19 }
  0x78   :  { %308 = vmatprep.subr.bf16.mxu0 %v3687_v20 }
  0x79   :  { %3425 = vmatpush3.bf16.msra.mxu1 %v3696_v27 }
  0x7a   :  { %3426 = vmatprep.subr.bf16.mxu1 %v4014_v1 }
  0x7b   :  { %309 = vmatpush1.bf16.msra.mxu0 %v3689_v22 }
  0x7c   :  { %3456 = vmatprep.subr.bf16.mxu0 %v4014_v1 }
  0x7d   :  { %3427 = vmatpush3.bf16.msra.mxu1 %v3697_v28 }
  0x7e   :  { %327 = vmatmul.mubr.bf16.vlgmr.msra.gmra.mrb[0].mxu0 %v116_v26  ;;  %3432 = vmatprep.subr.bf16.mxu1 %v4014_v1 }
  0x7f   :  { %3458 = vmatprep.mubr.msk.bf16.mxu0 %vm4015_vm0, %v4014_v1 }
  0x80   :  { %3429 = vmatmul.mubr.bf16.vlgmr.msra.gmra.mrb[0].mxu1 %v116_v26 }
  0x81   :  { %3434 = vmatprep.mubr.msk.bf16.mxu1 %vm4015_vm0, %v4014_v1 }
 0x151   :  { %v328_v36 = vpop.f32.mrb[0].mxu0 }
 0x152   :  { %v4188_v37 = vadd.f32 %v328_v36, %v154_v34  ;;  %v330_v38 = vpop.f32.mrb[1].mxu0 }
 0x153   :  { %v331_v39 = vadd.f32 %v330_v38, %v158_v35  ;;  %v332_v40 = vpop.f32.mrb[2].mxu0  ;;  %v371_v52 = vpop.f32.mrb[0].mxu1 }
 0x154   :  { %v4190_v41 = vadd.f32 %v332_v40, %v154_v34  ;;  %v334_v42 = vpop.f32.mrb[3].mxu0  ;;  %v372_v53 = vadd.f32 %v371_v52, %v162_v51  ;;  %v3430_v54 = vpop.f32.mrb[1].mxu1  ;;  %v4232_v21 = vpack.c.bf16 %v4188_v37, %v4188_v37 }
 0x155   :  { %v4193_v43 = vpack.c.bf16 %v331_v39, %v4188_v37  ;;  %v335_v44 = vadd.f32 %v334_v42, %v158_v35  ;;  %v374_v55 = vpop.f32.mrb[2].mxu1 }
 0x156   :  { %v4215_v56 = vpack.c.bf16 %v372_v53, %v372_v53  ;;  %v375_v57 = vadd.f32 %v374_v55, %v162_v51  ;;  %v3431_v58 = vpop.f32.mrb[3].mxu1  ;;  %v4238_v22 = vpack.c.bf16 %v4190_v41, %v4190_v41 }
 0x157   :  { %v4196_v45 = vpack.c.bf16 %v335_v44, %v4190_v41  ;;  %v394_v46 = vrot.slane %v4193_v43, 4 }
 0x158   :  { %v519_v59 = vsel %vm517_vm2, %v4215_v56, 0  ;;  %v4242_v25 = vpack.c.bf16 %v375_v57, %v375_v57 }
 0x159   :  { %v400_v47 = vsel %vm395_vm1, %v394_v46, 0  ;;  %v442_v48 = vrot.slane %v4196_v45, 4 }
 0x15a   :  { %3433 = vmatpush3.bf16.xpose.msra.mxu1 %v400_v47  ;;  %v565_v28 = vsel %vm517_vm2, %v4242_v25, 0 }
 0x15b   :  { %3438 = vmatprep.subr.bf16.mxu1 %v4014_v1  ;;  %v447_v49 = vsel %vm395_vm1, %v442_v48, 0 }
 0x161   :  { %3435 = vmatmul.mubr.msk.bf16.vlgmr.msra.gmra.mrb[4].mxu1 %vm395_vm1, %v4193_v43 }
 0x162   :  { %3439 = vmatpush3.bf16.xpose.msra.mxu1 %v447_v49  ;;  %3440 = vmatprep.mubr.msk.bf16.mxu1 %vm4015_vm0, %v4014_v1 }
 0x163   :  { %3444 = vmatprep.subr.bf16.mxu1 %v4014_v1 }
 0x169   :  { %3441 = vmatmul.mubr.msk.bf16.vlgmr.msra.gmra.mrb[8].mxu1 %vm395_vm1, %v4196_v45 }
 0x16a   :  { %3446 = vmatprep.mubr.msk.bf16.mxu1 %vm4015_vm0, %v4014_v1  ;;  %3445 = vmatpush3.bf16.msra.mxu1 %v519_v59 }
 0x16b   :  { %3450 = vmatprep.subr.bf16.mxu1 %v4014_v1 }
 0x234   :  { %v436_v60 = vpop.f32.mrb[4].mxu1 }
 0x235   :  { %v3436_v61 = vpop.f32.mrb[5].mxu1  ;;  %v490_v62 = vsel %vm489_vm3, %v436_v60, -inf }
 0x236   :  { %491 = vmax.xlane.f32.xlu0 %v490_v62  ;;  %v439_v63 = vpop.f32.mrb[6].mxu1 }
 0x237   :  { %v3437_v2 = vpop.f32.mrb[7].mxu1 }
 0x23c   :  { %v483_v3 = vpop.f32.mrb[8].mxu1 }
 0x23d   :  { %v3442_v4 = vpop.f32.mrb[9].mxu1  ;;  %v493_v5 = vsel %vm489_vm3, %v483_v3, -inf }
 0x23e   :  { %494 = vmax.xlane.f32.xlu0 %v493_v5  ;;  %v486_v6 = vpop.f32.mrb[10].mxu1 }
 0x23f   :  { %v3443_v7 = vpop.f32.mrb[11].mxu1 }
 0x254   :  { %609 = vrot.lane.b32.xlu0 %v4193_v43, %s4016_s2 }
 0x2c3   :  { %v492_v8 = vpop.xlane.xlu0 %491 }
 0x2c4   :  { %v496_v9 = vsub.f32 %v436_v60, %v492_v8 }
 0x2c6   :  { %v498_v10 = vmul.f32 1.442695, %v496_v9 }
 0x2c8   :  { %3786 = vpow2.f32 %v498_v10 }
 0x2cb   :  { %v495_v11 = vpop.xlane.xlu0 %494 }
 0x2cc   :  { %v497_v17 = vsub.f32 %v483_v3, %v495_v11 }
 0x2ce   :  { %v500_v18 = vmul.f32 1.442695, %v497_v17 }
 0x2cf   :  { %v610_v12 = vpop.permute.xlu0 %609 }
 0x2d0   :  { %v611_v13 = vrot.slane %v610_v12, 4  ;;  %3788 = vpow2.f32 %v500_v18 }
 0x2d2   :  { %v3787_v14 = vpop.eup %3786  ;;  %v619_v15 = vsel %vm395_vm1, %v611_v13, 0 }
 0x2d3   :  { %3457 = vmatpush3.bf16.xpose.msra.mxu0 %v619_v15  ;;  %v502_v16 = vsel %vm489_vm3, %v3787_v14, 0.0 }
 0x2d4   :  { %503 = vadd.xlane.f32.xlu1 %v502_v16  ;;  %3468 = vmatprep.subr.bf16.mxu0 %v4014_v1 }
 0x2da   :  { %v3789_v19 = vpop.eup %3788 }
 0x2db   :  { %v505_v20 = vsel %vm489_vm3, %v3789_v19, 0.0 }
 0x2e5   :  { %661 = vrot.lane.b32.xlu1 %v4196_v45, %s4016_s2 }
 0x309   :  { %506 = vadd.xlane.f32.xlu1 %v505_v20 }
 0x31a   :  { %613 = vrot.lane.b32.xlu1 %v4232_v21, %s4016_s2 }
 0x31e   :  { %665 = vrot.lane.b32.xlu1 %v4238_v22, %s4016_s2 }
 0x361   :  { %v504_v23 = vpop.xlane.xlu1 %503 }
 0x362   :  { %3790 = vrcp.f32 %v504_v23 }
 0x365   :  { %v662_v29 = vpop.permute.xlu1 %661 }
 0x366   :  { %v663_v36 = vrot.slane %v662_v29, 4 }
 0x368   :  { %v671_v39 = vsel %vm395_vm1, %v663_v36, 0 }
 0x36c   :  { %v3791_v24 = vpop.eup %3790 }
 0x36d   :  { %v510_v26 = vmul.f32 %v3791_v24, %v3787_v14 }
 0x36f   :  { %v512_v27 = vpack.c.bf16 %v510_v26, %v510_v26 }
 0x371   :  { %3447 = vmatmul.mubr.msk.bf16.vlgmr.msra.gmra.mrb[12].mxu1 %vm489_vm3, %v512_v27 }
 0x372   :  { %3451 = vmatpush3.bf16.msra.mxu1 %v565_v28  ;;  %3452 = vmatprep.mubr.msk.bf16.mxu1 %vm4015_vm0, %v4014_v1 }
 0x373   :  { %3462 = vmatprep.subr.bf16.mxu1 %v4014_v1 }
 0x396   :  { %v507_v32 = vpop.xlane.xlu1 %506 }
 0x397   :  { %3792 = vrcp.f32 %v507_v32 }
 0x39a   :  { %v614_v34 = vpop.permute.xlu1 %613 }
 0x39b   :  { %3459 = vmatmul.mubr.msk.bf16.vlgmr.msra.gmra.mrb[4].mxu0 %vm395_vm1, %v614_v34 }
 0x39c   :  { %3470 = vmatprep.mubr.msk.bf16.mxu0 %vm4015_vm0, %v4014_v1 }
 0x39e   :  { %v666_v40 = vpop.permute.xlu1 %665 }
 0x3a1   :  { %v3793_v35 = vpop.eup %3792 }
 0x3a2   :  { %v511_v37 = vmul.f32 %v3793_v35, %v3789_v19 }
 0x3a4   :  { %v513_v38 = vpack.c.bf16 %v511_v37, %v511_v37 }
 0x3a6   :  { %3453 = vmatmul.mubr.msk.bf16.vlgmr.msra.gmra.mrb[16].mxu1 %vm489_vm3, %v513_v38 }
 0x3a7   :  { %3463 = vmatpush3.bf16.xpose.msra.mxu1 %v671_v39  ;;  %3464 = vmatprep.mubr.msk.bf16.mxu1 %vm4015_vm0, %v4014_v1 }
 0x3a8   :  { %3474 = vmatprep.subr.bf16.mxu1 %v4014_v1 }
 0x3ae   :  { %3465 = vmatmul.mubr.msk.bf16.vlgmr.msra.gmra.mrb[20].mxu1 %vm395_vm1, %v666_v40 }
 0x3af   :  { %3476 = vmatprep.mubr.msk.bf16.mxu1 %vm4015_vm0, %v4014_v1 }
 0x444   :  { %v4261_v41 = vpop.f32.mrb[12].mxu1 }
 0x445   :  { %v3448_v42 = vpop.f32.mrb[13].mxu1 }
 0x446   :  { %v558_v44 = vpop.f32.mrb[14].mxu1 }
 0x447   :  { %v3449_v46 = vpop.f32.mrb[15].mxu1 }
 0x46e   :  { %v655_v47 = vpop.f32.mrb[4].mxu0 }
 0x46f   :  { %v3460_v48 = vpop.f32.mrb[5].mxu0  ;;  %v713_v49 = vsel %vm489_vm3, %v655_v47, -inf }
 0x470   :  { %714 = vmax.xlane.f32.xlu0 %v713_v49  ;;  %v658_v51 = vpop.f32.mrb[6].mxu0 }
 0x471   :  { %v3461_v52 = vpop.f32.mrb[7].mxu0 }
 0x479   :  { %v4264_v53 = vpop.f32.mrb[16].mxu1 }
 0x47a   :  { %v3454_v54 = vpop.f32.mrb[17].mxu1 }
 0x47b   :  { %v604_v55 = vpop.f32.mrb[18].mxu1 }
 0x47c   :  { %v3455_v57 = vpop.f32.mrb[19].mxu1 }
 0x481   :  { %v707_v58 = vpop.f32.mrb[20].mxu1 }
 0x482   :  { %v3466_v59 = vpop.f32.mrb[21].mxu1  ;;  %v716_v60 = vsel %vm489_vm3, %v707_v58, -inf }
 0x483   :  { %717 = vmax.xlane.f32.xlu1 %v716_v60  ;;  %v710_v61 = vpop.f32.mrb[22].mxu1 }
 0x484   :  { %v3467_v62 = vpop.f32.mrb[23].mxu1 }
 0x494   :  { %785 = vrot.lane.b32.xlu1 %v4242_v25, %s4016_s2 }
 0x498   :  { %835 = vrot.lane.b32.xlu1 %v4193_v43, %s4017_s25 }
 0x49c   :  { %886 = vrot.lane.b32.xlu1 %v4196_v45, %s4017_s25 }
 0x4a0   :  { %889 = vrot.lane.b32.xlu1 %v4238_v22, %s4017_s25 }
 0x4fd   :  { %v715_v63 = vpop.xlane.xlu0 %714 }
 0x4fe   :  { %v719_v2 = vsub.f32 %v655_v47, %v715_v63 }
 0x500   :  { %v721_v3 = vmul.f32 1.442695, %v719_v2 }
 0x502   :  { %3794 = vpow2.f32 %v721_v3 }
 0x50c   :  { %v3795_v4 = vpop.eup %3794 }
 0x50d   :  { %v725_v5 = vsel %vm489_vm3, %v3795_v4, 0.0 }
 0x50e   :  { %726 = vadd.xlane.f32.xlu0 %v725_v5 }
 0x510   :  { %v718_v6 = vpop.xlane.xlu1 %717 }
 0x511   :  { %v720_v7 = vsub.f32 %v707_v58, %v718_v6 }
 0x513   :  { %v723_v8 = vmul.f32 1.442695, %v720_v7 }
 0x514   :  { %v786_v9 = vpop.permute.xlu1 %785 }
 0x515   :  { %3796 = vpow2.f32 %v723_v8  ;;  %v791_v10 = vsel %vm517_vm2, %v786_v9, 0 }
 0x516   :  { %3475 = vmatpush3.bf16.msra.mxu1 %v791_v10 }
 0x517   :  { %3486 = vmatprep.subr.bf16.mxu1 %v4014_v1 }
 0x518   :  { %v836_v16 = vpop.permute.xlu1 %835 }
 0x519   :  { %v837_v24 = vrot.slane %v836_v16, 4 }
 0x51b   :  { %v844_v29 = vsel %vm395_vm1, %v837_v24, 0 }
 0x51c   :  { %v887_v23 = vpop.permute.xlu1 %886 }
 0x51d   :  { %v888_v27 = vrot.slane %v887_v23, 4 }
 0x51f   :  { %v3797_v11 = vpop.eup %3796  ;;  %v895_v34 = vsel %vm395_vm1, %v888_v27, 0 }
 0x520   :  { %v728_v12 = vsel %vm489_vm3, %v3797_v11, 0.0  ;;  %v890_v36 = vpop.permute.xlu1 %889 }
 0x521   :  { %729 = vadd.xlane.f32.xlu0 %v728_v12 }
 0x537   :  { %737 = vrot.lane.b32.xlu0 %v4215_v56, %s4016_s2 }
 0x53b   :  { %838 = vrot.lane.b32.xlu0 %v4232_v21, %s4017_s25 }
 0x59b   :  { %v727_v13 = vpop.xlane.xlu0 %726 }
 0x59c   :  { %3798 = vrcp.f32 %v727_v13 }
 0x5a6   :  { %v3799_v14 = vpop.eup %3798 }
 0x5a7   :  { %v733_v17 = vmul.f32 %v3799_v14, %v3795_v4 }
 0x5a9   :  { %v735_v20 = vpack.c.bf16 %v733_v17, %v733_v17 }
 0x5ae   :  { %v730_v15 = vpop.xlane.xlu0 %729 }
 0x5af   :  { %3800 = vrcp.f32 %v730_v15 }
 0x5b2   :  { %v738_v18 = vpop.permute.xlu0 %737 }
 0x5b3   :  { %v743_v19 = vsel %vm517_vm2, %v738_v18, 0 }
 0x5b4   :  { %3469 = vmatpush3.bf16.msra.mxu0 %v743_v19 }
 0x5b5   :  { %3480 = vmatprep.subr.bf16.mxu0 %v4014_v1 }
 0x5b6   :  { %v839_v35 = vpop.permute.xlu0 %838 }
 0x5b7   :  { %3471 = vmatmul.mubr.msk.bf16.vlgmr.msra.gmra.mrb[8].mxu0 %vm489_vm3, %v735_v20 }
 0x5b8   :  { %3482 = vmatprep.mubr.msk.bf16.mxu0 %vm4015_vm0, %v4014_v1 }
 0x5b9   :  { %v3801_v26 = vpop.eup %3800 }
 0x5ba   :  { %v734_v28 = vmul.f32 %v3801_v26, %v3797_v11 }
 0x5bc   :  { %v736_v32 = vpack.c.bf16 %v734_v28, %v734_v28 }
 0x5bd   :  { %3481 = vmatpush3.bf16.xpose.msra.mxu0 %v844_v29 }
 0x5be   :  { %3477 = vmatmul.mubr.msk.bf16.vlgmr.msra.gmra.mrb[24].mxu1 %vm489_vm3, %v736_v32  ;;  %3492 = vmatprep.subr.bf16.mxu0 %v4014_v1 }
 0x5bf   :  { %3487 = vmatpush3.bf16.xpose.msra.mxu1 %v895_v34  ;;  %3488 = vmatprep.mubr.msk.bf16.mxu1 %vm4015_vm0, %v4014_v1 }
 0x5c0   :  { %3498 = vmatprep.subr.bf16.mxu1 %v4014_v1 }
 0x5c4   :  { %3483 = vmatmul.mubr.msk.bf16.vlgmr.msra.gmra.mrb[12].mxu0 %vm395_vm1, %v839_v35 }
 0x5c5   :  { %3494 = vmatprep.mubr.msk.bf16.mxu0 %vm4015_vm0, %v4014_v1 }
 0x5c6   :  { %3489 = vmatmul.mubr.msk.bf16.vlgmr.msra.gmra.mrb[28].mxu1 %vm395_vm1, %v890_v36 }
 0x5c7   :  { %3500 = vmatprep.mubr.msk.bf16.mxu1 %vm4015_vm0, %v4014_v1 }
 0x68a   :  { %v4301_v37 = vpop.f32.mrb[8].mxu0 }
 0x68b   :  { %v3472_v38 = vpop.f32.mrb[9].mxu0 }
 0x68c   :  { %v782_v39 = vpop.f32.mrb[10].mxu0 }
 0x68d   :  { %v3473_v40 = vpop.f32.mrb[11].mxu0 }
 0x691   :  { %v4303_v42 = vpop.f32.mrb[24].mxu1 }
 0x692   :  { %v3478_v44 = vpop.f32.mrb[25].mxu1 }
 0x693   :  { %v830_v46 = vpop.f32.mrb[26].mxu1 }
 0x694   :  { %v3479_v47 = vpop.f32.mrb[27].mxu1 }
 0x697   :  { %v880_v48 = vpop.f32.mrb[12].mxu0 }
 0x698   :  { %v3484_v49 = vpop.f32.mrb[13].mxu0  ;;  %v937_v51 = vsel %vm489_vm3, %v880_v48, -inf }
 0x699   :  { %938 = vmax.xlane.f32.xlu0 %v937_v51  ;;  %v883_v52 = vpop.f32.mrb[14].mxu0  ;;  %v931_v54 = vpop.f32.mrb[28].mxu1 }
 0x69a   :  { %v3485_v55 = vpop.f32.mrb[15].mxu0  ;;  %v3490_v57 = vpop.f32.mrb[29].mxu1  ;;  %v940_v58 = vsel %vm489_vm3, %v931_v54, -inf }
 0x69b   :  { %941 = vmax.xlane.f32.xlu1 %v940_v58  ;;  %v934_v59 = vpop.f32.mrb[30].mxu1 }
 0x69c   :  { %v3491_v60 = vpop.f32.mrb[31].mxu1 }
 0x6ac   :  { %1009 = vrot.lane.b32.xlu1 %v4242_v25, %s4017_s25 }
 0x6b0   :  { %1059 = vrot.lane.b32.xlu1 %v4193_v43, %s4018_s19 }
 0x6b4   :  { %1110 = vrot.lane.b32.xlu1 %v4196_v45, %s4018_s19 }
 0x6b8   :  { %1113 = vrot.lane.b32.xlu1 %v4238_v22, %s4018_s19 }
 0x726   :  { %v939_v61 = vpop.xlane.xlu0 %938 }
 0x727   :  { %v943_v62 = vsub.f32 %v880_v48, %v939_v61 }
 0x728   :  { %v942_v63 = vpop.xlane.xlu1 %941 }
 0x729   :  { %v945_v2 = vmul.f32 1.442695, %v943_v62  ;;  %v944_v3 = vsub.f32 %v931_v54, %v942_v63 }
 0x72b   :  { %3802 = vpow2.f32 %v945_v2  ;;  %v947_v4 = vmul.f32 1.442695, %v944_v3 }
 0x72c   :  { %v1010_v5 = vpop.permute.xlu1 %1009 }
 0x72d   :  { %3804 = vpow2.f32 %v947_v4  ;;  %v1015_v6 = vsel %vm517_vm2, %v1010_v5, 0 }
 0x72e   :  { %3499 = vmatpush3.bf16.msra.mxu1 %v1015_v6 }
 0x72f   :  { %3510 = vmatprep.subr.bf16.mxu1 %v4014_v1 }
 0x730   :  { %v1060_v13 = vpop.permute.xlu1 %1059 }
 0x731   :  { %v1061_v19 = vrot.slane %v1060_v13, 4 }
 0x733   :  { %v1068_v27 = vsel %vm395_vm1, %v1061_v19, 0 }
 0x734   :  { %v1111_v18 = vpop.permute.xlu1 %1110 }
 0x735   :  { %v3803_v7 = vpop.eup %3802  ;;  %v1112_v24 = vrot.slane %v1111_v18, 4 }
 0x736   :  { %v949_v8 = vsel %vm489_vm3, %v3803_v7, 0.0 }
 0x737   :  { %v3805_v9 = vpop.eup %3804  ;;  %950 = vadd.xlane.f32.xlu0 %v949_v8  ;;  %v1119_v29 = vsel %vm395_vm1, %v1112_v24, 0 }
 0x738   :  { %v952_v10 = vsel %vm489_vm3, %v3805_v9, 0.0  ;;  %v1114_v34 = vpop.permute.xlu1 %1113 }
 0x73b   :  { %953 = vadd.xlane.f32.xlu0 %v952_v10 }
 0x751   :  { %961 = vrot.lane.b32.xlu0 %v4215_v56, %s4017_s25 }
 0x755   :  { %1062 = vrot.lane.b32.xlu0 %v4232_v21, %s4018_s19 }
 0x7c4   :  { %v951_v11 = vpop.xlane.xlu0 %950 }
 0x7c5   :  { %3806 = vrcp.f32 %v951_v11 }
 0x7c8   :  { %v954_v12 = vpop.xlane.xlu0 %953 }
 0x7c9   :  { %3808 = vrcp.f32 %v954_v12 }
 0x7cc   :  { %v962_v14 = vpop.permute.xlu0 %961 }
 0x7cd   :  { %v967_v15 = vsel %vm517_vm2, %v962_v14, 0 }
 0x7ce   :  { %3493 = vmatpush3.bf16.msra.mxu0 %v967_v15 }
 0x7cf   :  { %v3807_v16 = vpop.eup %3806  ;;  %3504 = vmatprep.subr.bf16.mxu0 %v4014_v1 }
 0x7d0   :  { %v957_v17 = vmul.f32 %v3807_v16, %v3803_v7  ;;  %v1063_v32 = vpop.permute.xlu0 %1062 }
 0x7d2   :  { %v959_v20 = vpack.c.bf16 %v957_v17, %v957_v17 }
 0x7d3   :  { %v3809_v23 = vpop.eup %3808 }
 0x7d4   :  { %v958_v26 = vmul.f32 %v3809_v23, %v3805_v9  ;;  %3495 = vmatmul.mubr.msk.bf16.vlgmr.msra.gmra.mrb[16].mxu0 %vm489_vm3, %v959_v20 }
 0x7d5   :  { %3506 = vmatprep.mubr.msk.bf16.mxu0 %vm4015_vm0, %v4014_v1 }
 0x7d6   :  { %v960_v28 = vpack.c.bf16 %v958_v26, %v958_v26 }
 0x7d7   :  { %3505 = vmatpush3.bf16.xpose.msra.mxu0 %v1068_v27 }
 0x7d8   :  { %3501 = vmatmul.mubr.msk.bf16.vlgmr.msra.gmra.mrb[32].mxu1 %vm489_vm3, %v960_v28  ;;  %3516 = vmatprep.subr.bf16.mxu0 %v4014_v1 }
 0x7d9   :  { %3511 = vmatpush3.bf16.xpose.msra.mxu1 %v1119_v29  ;;  %3512 = vmatprep.mubr.msk.bf16.mxu1 %vm4015_vm0, %v4014_v1 }
 0x7da   :  { %3522 = vmatprep.subr.bf16.mxu1 %v4014_v1 }
 0x7de   :  { %3507 = vmatmul.mubr.msk.bf16.vlgmr.msra.gmra.mrb[20].mxu0 %vm395_vm1, %v1063_v32 }
 0x7df   :  { %3518 = vmatprep.mubr.msk.bf16.mxu0 %vm4015_vm0, %v4014_v1 }
 0x7e0   :  { %3513 = vmatmul.mubr.msk.bf16.vlgmr.msra.gmra.mrb[36].mxu1 %vm395_vm1, %v1114_v34 }
 0x7e1   :  { %3524 = vmatprep.mubr.msk.bf16.mxu1 %vm4015_vm0, %v4014_v1 }
 0x8a7   :  { %v4341_v35 = vpop.f32.mrb[16].mxu0 }
 0x8a8   :  { %v3496_v36 = vpop.f32.mrb[17].mxu0 }
 0x8a9   :  { %v1006_v38 = vpop.f32.mrb[18].mxu0 }
 0x8aa   :  { %v3497_v39 = vpop.f32.mrb[19].mxu0 }
 0x8ab   :  { %v4343_v40 = vpop.f32.mrb[32].mxu1 }
 0x8ac   :  { %v3502_v44 = vpop.f32.mrb[33].mxu1 }
 0x8ad   :  { %v1054_v46 = vpop.f32.mrb[34].mxu1 }
 0x8ae   :  { %v3503_v47 = vpop.f32.mrb[35].mxu1 }
 0x8b1   :  { %v1104_v48 = vpop.f32.mrb[20].mxu0 }
 0x8b2   :  { %v3508_v49 = vpop.f32.mrb[21].mxu0  ;;  %v1161_v51 = vsel %vm489_vm3, %v1104_v48, -inf }
 0x8b3   :  { %1162 = vmax.xlane.f32.xlu0 %v1161_v51  ;;  %v1107_v52 = vpop.f32.mrb[22].mxu0  ;;  %v1155_v54 = vpop.f32.mrb[36].mxu1 }
 0x8b4   :  { %v3509_v55 = vpop.f32.mrb[23].mxu0  ;;  %v3514_v57 = vpop.f32.mrb[37].mxu1  ;;  %v1164_v58 = vsel %vm489_vm3, %v1155_v54, -inf }
 0x8b5   :  { %1165 = vmax.xlane.f32.xlu1 %v1164_v58  ;;  %v1158_v59 = vpop.f32.mrb[38].mxu1 }
 0x8b6   :  { %v3515_v60 = vpop.f32.mrb[39].mxu1 }
 0x8c6   :  { %1233 = vrot.lane.b32.xlu1 %v4242_v25, %s4018_s19 }
 0x8ca   :  { %1283 = vrot.lane.b32.xlu1 %v4193_v43, %s4010_s0 }
 0x8ce   :  { %1334 = vrot.lane.b32.xlu1 %v4196_v45, %s4010_s0 }
 0x8d2   :  { %1337 = vrot.lane.b32.xlu1 %v4238_v22, %s4010_s0 }
 0x940   :  { %v1163_v61 = vpop.xlane.xlu0 %1162 }
 0x941   :  { %v1167_v62 = vsub.f32 %v1104_v48, %v1163_v61 }
 0x942   :  { %v1166_v63 = vpop.xlane.xlu1 %1165 }
 0x943   :  { %v1169_v2 = vmul.f32 1.442695, %v1167_v62  ;;  %v1168_v3 = vsub.f32 %v1155_v54, %v1166_v63 }
 0x945   :  { %3810 = vpow2.f32 %v1169_v2  ;;  %v1171_v4 = vmul.f32 1.442695, %v1168_v3 }
 0x946   :  { %v1234_v5 = vpop.permute.xlu1 %1233 }
 0x947   :  { %3812 = vpow2.f32 %v1171_v4  ;;  %v1239_v6 = vsel %vm517_vm2, %v1234_v5, 0 }
 0x948   :  { %3523 = vmatpush3.bf16.msra.mxu1 %v1239_v6 }
 0x949   :  { %3534 = vmatprep.subr.bf16.mxu1 %v4014_v1 }
 0x94a   :  { %v1284_v13 = vpop.permute.xlu1 %1283 }
 0x94b   :  { %v1285_v19 = vrot.slane %v1284_v13, 4 }
 0x94d   :  { %v1292_v27 = vsel %vm395_vm1, %v1285_v19, 0 }
 0x94e   :  { %v1335_v18 = vpop.permute.xlu1 %1334 }
 0x94f   :  { %v3811_v7 = vpop.eup %3810  ;;  %v1336_v24 = vrot.slane %v1335_v18, 4 }
 0x950   :  { %v1173_v8 = vsel %vm489_vm3, %v3811_v7, 0.0 }
 0x951   :  { %v3813_v9 = vpop.eup %3812  ;;  %1174 = vadd.xlane.f32.xlu0 %v1173_v8  ;;  %v1343_v29 = vsel %vm395_vm1, %v1336_v24, 0 }
 0x952   :  { %v1176_v10 = vsel %vm489_vm3, %v3813_v9, 0.0  ;;  %v1338_v34 = vpop.permute.xlu1 %1337 }
 0x955   :  { %1177 = vadd.xlane.f32.xlu0 %v1176_v10 }
 0x96b   :  { %1185 = vrot.lane.b32.xlu0 %v4215_v56, %s4018_s19 }
 0x96f   :  { %1286 = vrot.lane.b32.xlu0 %v4232_v21, %s4010_s0 }
 0x9de   :  { %v1175_v11 = vpop.xlane.xlu0 %1174 }
 0x9df   :  { %3814 = vrcp.f32 %v1175_v11 }
 0x9e2   :  { %v1178_v12 = vpop.xlane.xlu0 %1177 }
 0x9e3   :  { %3816 = vrcp.f32 %v1178_v12 }
 0x9e6   :  { %v1186_v14 = vpop.permute.xlu0 %1185 }
 0x9e7   :  { %v1191_v15 = vsel %vm517_vm2, %v1186_v14, 0 }
 0x9e8   :  { %3517 = vmatpush3.bf16.msra.mxu0 %v1191_v15 }
 0x9e9   :  { %v3815_v16 = vpop.eup %3814  ;;  %3528 = vmatprep.subr.bf16.mxu0 %v4014_v1 }
 0x9ea   :  { %v1181_v17 = vmul.f32 %v3815_v16, %v3811_v7  ;;  %v1287_v32 = vpop.permute.xlu0 %1286 }
 0x9ec   :  { %v1183_v20 = vpack.c.bf16 %v1181_v17, %v1181_v17 }
 0x9ed   :  { %v3817_v23 = vpop.eup %3816 }
 0x9ee   :  { %v1182_v26 = vmul.f32 %v3817_v23, %v3813_v9  ;;  %3519 = vmatmul.mubr.msk.bf16.vlgmr.msra.gmra.mrb[24].mxu0 %vm489_vm3, %v1183_v20 }
 0x9ef   :  { %3530 = vmatprep.mubr.msk.bf16.mxu0 %vm4015_vm0, %v4014_v1 }
 0x9f0   :  { %v1184_v28 = vpack.c.bf16 %v1182_v26, %v1182_v26 }
 0x9f1   :  { %3529 = vmatpush3.bf16.xpose.msra.mxu0 %v1292_v27 }
 0x9f2   :  { %3525 = vmatmul.mubr.msk.bf16.vlgmr.msra.gmra.mrb[40].mxu1 %vm489_vm3, %v1184_v28  ;;  %3540 = vmatprep.subr.bf16.mxu0 %v4014_v1 }
 0x9f3   :  { %3535 = vmatpush3.bf16.xpose.msra.mxu1 %v1343_v29  ;;  %3536 = vmatprep.mubr.msk.bf16.mxu1 %vm4015_vm0, %v4014_v1 }
 0x9f4   :  { %3546 = vmatprep.subr.bf16.mxu1 %v4014_v1 }
 0x9f8   :  { %3531 = vmatmul.mubr.msk.bf16.vlgmr.msra.gmra.mrb[28].mxu0 %vm395_vm1, %v1287_v32 }
 0x9f9   :  { %3542 = vmatprep.mubr.msk.bf16.mxu0 %vm4015_vm0, %v4014_v1 }
 0x9fa   :  { %3537 = vmatmul.mubr.msk.bf16.vlgmr.msra.gmra.mrb[44].mxu1 %vm395_vm1, %v1338_v34 }
 0x9fb   :  { %3548 = vmatprep.mubr.msk.bf16.mxu1 %vm4015_vm0, %v4014_v1 }
 0xac1   :  { %v4381_v36 = vpop.f32.mrb[24].mxu0 }
 0xac2   :  { %v3520_v38 = vpop.f32.mrb[25].mxu0 }
 0xac3   :  { %v1230_v39 = vpop.f32.mrb[26].mxu0 }
 0xac4   :  { %v3521_v44 = vpop.f32.mrb[27].mxu0 }
 0xac5   :  { %v4383_v46 = vpop.f32.mrb[40].mxu1 }
 0xac6   :  { %v3526_v47 = vpop.f32.mrb[41].mxu1 }
 0xac7   :  { %v1278_v48 = vpop.f32.mrb[42].mxu1 }
 0xac8   :  { %v3527_v49 = vpop.f32.mrb[43].mxu1 }
 0xacb   :  { %v1328_v51 = vpop.f32.mrb[28].mxu0 }
 0xacc   :  { %v3532_v52 = vpop.f32.mrb[29].mxu0  ;;  %v1385_v54 = vsel %vm489_vm3, %v1328_v51, -inf }
 0xacd   :  { %1386 = vmax.xlane.f32.xlu0 %v1385_v54  ;;  %v1331_v55 = vpop.f32.mrb[30].mxu0  ;;  %v1379_v57 = vpop.f32.mrb[44].mxu1 }
 0xace   :  { %v3533_v58 = vpop.f32.mrb[31].mxu0  ;;  %v3538_v59 = vpop.f32.mrb[45].mxu1  ;;  %v1388_v60 = vsel %vm489_vm3, %v1379_v57, -inf }
 0xacf   :  { %1389 = vmax.xlane.f32.xlu1 %v1388_v60  ;;  %v1382_v61 = vpop.f32.mrb[46].mxu1 }
 0xad0   :  { %v3539_v62 = vpop.f32.mrb[47].mxu1 }
 0xae0   :  { %1457 = vrot.lane.b32.xlu1 %v4242_v25, %s4010_s0 }
 0xae4   :  { %1507 = vrot.lane.b32.xlu1 %v4193_v43, %s4019_s27 }
 0xae8   :  { %1558 = vrot.lane.b32.xlu1 %v4196_v45, %s4019_s27 }
 0xaec   :  { %1561 = vrot.lane.b32.xlu1 %v4238_v22, %s4019_s27 }
 0xb5a   :  { %v1387_v63 = vpop.xlane.xlu0 %1386 }
 0xb5b   :  { %v1391_v2 = vsub.f32 %v1328_v51, %v1387_v63 }
 0xb5c   :  { %v1390_v3 = vpop.xlane.xlu1 %1389 }
 0xb5d   :  { %v1393_v4 = vmul.f32 1.442695, %v1391_v2  ;;  %v1392_v5 = vsub.f32 %v1379_v57, %v1390_v3 }
 0xb5f   :  { %3818 = vpow2.f32 %v1393_v4  ;;  %v1395_v6 = vmul.f32 1.442695, %v1392_v5 }
 0xb60   :  { %v1458_v7 = vpop.permute.xlu1 %1457 }
 0xb61   :  { %3820 = vpow2.f32 %v1395_v6  ;;  %v1463_v8 = vsel %vm517_vm2, %v1458_v7, 0 }
 0xb62   :  { %3547 = vmatpush3.bf16.msra.mxu1 %v1463_v8 }
 0xb63   :  { %3558 = vmatprep.subr.bf16.mxu1 %v4014_v1 }
 0xb64   :  { %v1508_v15 = vpop.permute.xlu1 %1507 }
 0xb65   :  { %v1509_v23 = vrot.slane %v1508_v15, 4 }
 0xb67   :  { %v1516_v29 = vsel %vm395_vm1, %v1509_v23, 0 }
 0xb68   :  { %v1559_v20 = vpop.permute.xlu1 %1558 }
 0xb69   :  { %v3819_v9 = vpop.eup %3818  ;;  %v1560_v27 = vrot.slane %v1559_v20, 4 }
 0xb6a   :  { %v1397_v10 = vsel %vm489_vm3, %v3819_v9, 0.0 }
 0xb6b   :  { %v3821_v11 = vpop.eup %3820  ;;  %1398 = vadd.xlane.f32.xlu0 %v1397_v10  ;;  %v1567_v34 = vsel %vm395_vm1, %v1560_v27, 0 }
 0xb6c   :  { %v1400_v12 = vsel %vm489_vm3, %v3821_v11, 0.0  ;;  %v1562_v39 = vpop.permute.xlu1 %1561 }
 0xb6f   :  { %1401 = vadd.xlane.f32.xlu0 %v1400_v12 }
 0xb85   :  { %1409 = vrot.lane.b32.xlu0 %v4215_v56, %s4010_s0 }
 0xb89   :  { %1510 = vrot.lane.b32.xlu0 %v4232_v21, %s4019_s27 }
 0xbf8   :  { %v1399_v13 = vpop.xlane.xlu0 %1398 }
 0xbf9   :  { %3822 = vrcp.f32 %v1399_v13 }
 0xbfc   :  { %v1402_v14 = vpop.xlane.xlu0 %1401 }
 0xbfd   :  { %3824 = vrcp.f32 %v1402_v14 }
 0xc00   :  { %v1410_v16 = vpop.permute.xlu0 %1409 }
 0xc01   :  { %v1415_v17 = vsel %vm517_vm2, %v1410_v16, 0 }
 0xc02   :  { %3541 = vmatpush3.bf16.msra.mxu0 %v1415_v17 }
 0xc03   :  { %v3823_v18 = vpop.eup %3822  ;;  %3552 = vmatprep.subr.bf16.mxu0 %v4014_v1 }
 0xc04   :  { %v1405_v19 = vmul.f32 %v3823_v18, %v3819_v9  ;;  %v1511_v38 = vpop.permute.xlu0 %1510 }
 0xc06   :  { %v1407_v24 = vpack.c.bf16 %v1405_v19, %v1405_v19 }
 0xc07   :  { %v3825_v26 = vpop.eup %3824 }
 0xc08   :  { %v1406_v28 = vmul.f32 %v3825_v26, %v3821_v11  ;;  %3543 = vmatmul.mubr.msk.bf16.vlgmr.msra.gmra.mrb[32].mxu0 %vm489_vm3, %v1407_v24 }
 0xc09   :  { %3554 = vmatprep.mubr.msk.bf16.mxu0 %vm4015_vm0, %v4014_v1 }
 0xc0a   :  { %v1408_v32 = vpack.c.bf16 %v1406_v28, %v1406_v28 }
 0xc0b   :  { %3553 = vmatpush3.bf16.xpose.msra.mxu0 %v1516_v29 }
 0xc0c   :  { %3549 = vmatmul.mubr.msk.bf16.vlgmr.msra.gmra.mrb[48].mxu1 %vm489_vm3, %v1408_v32  ;;  %3564 = vmatprep.subr.bf16.mxu0 %v4014_v1 }
 0xc0d   :  { %3559 = vmatpush3.bf16.xpose.msra.mxu1 %v1567_v34  ;;  %3560 = vmatprep.mubr.msk.bf16.mxu1 %vm4015_vm0, %v4014_v1 }
 0xc0e   :  { %3570 = vmatprep.subr.bf16.mxu1 %v4014_v1 }
 0xc12   :  { %3555 = vmatmul.mubr.msk.bf16.vlgmr.msra.gmra.mrb[36].mxu0 %vm395_vm1, %v1511_v38 }
 0xc13   :  { %3566 = vmatprep.mubr.msk.bf16.mxu0 %vm4015_vm0, %v4014_v1 }
 0xc14   :  { %3561 = vmatmul.mubr.msk.bf16.vlgmr.msra.gmra.mrb[52].mxu1 %vm395_vm1, %v1562_v39 }
 0xc15   :  { %3572 = vmatprep.mubr.msk.bf16.mxu1 %vm4015_vm0, %v4014_v1 }
 0xcdb   :  { %v4421_v44 = vpop.f32.mrb[32].mxu0 }
 0xcdc   :  { %v3544_v47 = vpop.f32.mrb[33].mxu0 }
 0xcdd   :  { %v1454_v48 = vpop.f32.mrb[34].mxu0 }
 0xcde   :  { %v3545_v49 = vpop.f32.mrb[35].mxu0 }
 0xcdf   :  { %v4423_v51 = vpop.f32.mrb[48].mxu1 }
 0xce0   :  { %v3550_v52 = vpop.f32.mrb[49].mxu1 }
 0xce1   :  { %v1502_v54 = vpop.f32.mrb[50].mxu1 }
 0xce2   :  { %v3551_v55 = vpop.f32.mrb[51].mxu1 }
 0xce5   :  { %v1552_v57 = vpop.f32.mrb[36].mxu0 }
 0xce6   :  { %v3556_v58 = vpop.f32.mrb[37].mxu0  ;;  %v1609_v59 = vsel %vm489_vm3, %v1552_v57, -inf }
 0xce7   :  { %1610 = vmax.xlane.f32.xlu0 %v1609_v59  ;;  %v1555_v60 = vpop.f32.mrb[38].mxu0  ;;  %v1603_v61 = vpop.f32.mrb[52].mxu1 }
 0xce8   :  { %v3557_v62 = vpop.f32.mrb[39].mxu0  ;;  %v3562_v63 = vpop.f32.mrb[53].mxu1  ;;  %v1612_v2 = vsel %vm489_vm3, %v1603_v61, -inf }
 0xce9   :  { %1613 = vmax.xlane.f32.xlu1 %v1612_v2  ;;  %v1606_v3 = vpop.f32.mrb[54].mxu1 }
 0xcea   :  { %v3563_v4 = vpop.f32.mrb[55].mxu1 }
 0xcfa   :  { %1681 = vrot.lane.b32.xlu1 %v4242_v25, %s4019_s27 }
 0xcfe   :  { %1731 = vrot.lane.b32.xlu1 %v4193_v43, %s4020_s28 }
 0xd02   :  { %1782 = vrot.lane.b32.xlu1 %v4196_v45, %s4020_s28 }
 0xd06   :  { %1785 = vrot.lane.b32.xlu1 %v4238_v22, %s4020_s28 }
 0xd74   :  { %v1611_v5 = vpop.xlane.xlu0 %1610 }
 0xd75   :  { %v1615_v6 = vsub.f32 %v1552_v57, %v1611_v5 }
 0xd76   :  { %v1614_v7 = vpop.xlane.xlu1 %1613 }
 0xd77   :  { %v1617_v8 = vmul.f32 1.442695, %v1615_v6  ;;  %v1616_v9 = vsub.f32 %v1603_v61, %v1614_v7 }
 0xd79   :  { %3826 = vpow2.f32 %v1617_v8  ;;  %v1619_v10 = vmul.f32 1.442695, %v1616_v9 }
 0xd7a   :  { %v1682_v11 = vpop.permute.xlu1 %1681 }
 0xd7b   :  { %3828 = vpow2.f32 %v1619_v10  ;;  %v1687_v12 = vsel %vm517_vm2, %v1682_v11, 0 }
 0xd7c   :  { %3571 = vmatpush3.bf16.msra.mxu1 %v1687_v12 }
 0xd7d   :  { %3582 = vmatprep.subr.bf16.mxu1 %v4014_v1 }
 0xd7e   :  { %v1732_v19 = vpop.permute.xlu1 %1731 }
 0xd7f   :  { %v1733_v28 = vrot.slane %v1732_v19, 4 }
 0xd81   :  { %v1740_v39 = vsel %vm395_vm1, %v1733_v28, 0 }
 0xd82   :  { %v1783_v27 = vpop.permute.xlu1 %1782 }
 0xd83   :  { %v3827_v13 = vpop.eup %3826  ;;  %v1784_v34 = vrot.slane %v1783_v27, 4 }
 0xd84   :  { %v1621_v14 = vsel %vm489_vm3, %v3827_v13, 0.0 }
 0xd85   :  { %v3829_v15 = vpop.eup %3828  ;;  %1622 = vadd.xlane.f32.xlu0 %v1621_v14  ;;  %v1791_v48 = vsel %vm395_vm1, %v1784_v34, 0 }
 0xd86   :  { %v1624_v16 = vsel %vm489_vm3, %v3829_v15, 0.0  ;;  %v1786_v52 = vpop.permute.xlu1 %1785 }
 0xd89   :  { %1625 = vadd.xlane.f32.xlu0 %v1624_v16 }
 0xd9f   :  { %1633 = vrot.lane.b32.xlu0 %v4215_v56, %s4019_s27 }
 0xda3   :  { %1734 = vrot.lane.b32.xlu0 %v4232_v21, %s4020_s28 }
 0xe12   :  { %v1623_v17 = vpop.xlane.xlu0 %1622 }
 0xe13   :  { %3830 = vrcp.f32 %v1623_v17 }
 0xe16   :  { %v1626_v18 = vpop.xlane.xlu0 %1625 }
 0xe17   :  { %3832 = vrcp.f32 %v1626_v18 }
 0xe1a   :  { %v1634_v20 = vpop.permute.xlu0 %1633 }
 0xe1b   :  { %v1639_v23 = vsel %vm517_vm2, %v1634_v20, 0 }
 0xe1c   :  { %3565 = vmatpush3.bf16.msra.mxu0 %v1639_v23 }
 0xe1d   :  { %v3831_v24 = vpop.eup %3830  ;;  %3576 = vmatprep.subr.bf16.mxu0 %v4014_v1 }
 0xe1e   :  { %v1629_v26 = vmul.f32 %v3831_v24, %v3827_v13  ;;  %v1735_v49 = vpop.permute.xlu0 %1734 }
 0xe20   :  { %v1631_v29 = vpack.c.bf16 %v1629_v26, %v1629_v26 }
 0xe21   :  { %v3833_v32 = vpop.eup %3832 }
 0xe22   :  { %v1630_v38 = vmul.f32 %v3833_v32, %v3829_v15  ;;  %3567 = vmatmul.mubr.msk.bf16.vlgmr.msra.gmra.mrb[40].mxu0 %vm489_vm3, %v1631_v29 }
 0xe23   :  { %3578 = vmatprep.mubr.msk.bf16.mxu0 %vm4015_vm0, %v4014_v1 }
 0xe24   :  { %v1632_v47 = vpack.c.bf16 %v1630_v38, %v1630_v38 }
 0xe25   :  { %3577 = vmatpush3.bf16.xpose.msra.mxu0 %v1740_v39 }
 0xe26   :  { %3573 = vmatmul.mubr.msk.bf16.vlgmr.msra.gmra.mrb[56].mxu1 %vm489_vm3, %v1632_v47  ;;  %3588 = vmatprep.subr.bf16.mxu0 %v4014_v1 }
 0xe27   :  { %3583 = vmatpush3.bf16.xpose.msra.mxu1 %v1791_v48  ;;  %3584 = vmatprep.mubr.msk.bf16.mxu1 %vm4015_vm0, %v4014_v1 }
 0xe28   :  { %3594 = vmatprep.subr.bf16.mxu1 %v4014_v1 }
 0xe2c   :  { %3579 = vmatmul.mubr.msk.bf16.vlgmr.msra.gmra.mrb[44].mxu0 %vm395_vm1, %v1735_v49 }
 0xe2d   :  { %3590 = vmatprep.mubr.msk.bf16.mxu0 %vm4015_vm0, %v4014_v1 }
 0xe2e   :  { %3585 = vmatmul.mubr.msk.bf16.vlgmr.msra.gmra.mrb[60].mxu1 %vm395_vm1, %v1786_v52 }
 0xe2f   :  { %3596 = vmatprep.mubr.msk.bf16.mxu1 %vm4015_vm0, %v4014_v1 }
 0xef5   :  { %v4461_v54 = vpop.f32.mrb[40].mxu0 }
 0xef6   :  { %v3568_v55 = vpop.f32.mrb[41].mxu0 }
 0xef7   :  { %v1678_v57 = vpop.f32.mrb[42].mxu0 }
 0xef8   :  { %v3569_v58 = vpop.f32.mrb[43].mxu0 }
 0xef9   :  { %v4463_v59 = vpop.f32.mrb[56].mxu1 }
 0xefa   :  { %v3574_v60 = vpop.f32.mrb[57].mxu1 }
 0xefb   :  { %v1726_v61 = vpop.f32.mrb[58].mxu1 }
 0xefc   :  { %v3575_v62 = vpop.f32.mrb[59].mxu1 }
 0xeff   :  { %v1776_v63 = vpop.f32.mrb[44].mxu0 }
 0xf00   :  { %v3580_v2 = vpop.f32.mrb[45].mxu0  ;;  %v1833_v3 = vsel %vm489_vm3, %v1776_v63, -inf }
 0xf01   :  { %1834 = vmax.xlane.f32.xlu0 %v1833_v3  ;;  %v1779_v4 = vpop.f32.mrb[46].mxu0  ;;  %v1827_v5 = vpop.f32.mrb[60].mxu1 }
 0xf02   :  { %v3581_v6 = vpop.f32.mrb[47].mxu0  ;;  %v3586_v7 = vpop.f32.mrb[61].mxu1  ;;  %v1836_v8 = vsel %vm489_vm3, %v1827_v5, -inf }
 0xf03   :  { %1837 = vmax.xlane.f32.xlu1 %v1836_v8  ;;  %v1830_v9 = vpop.f32.mrb[62].mxu1 }
 0xf04   :  { %v3587_v10 = vpop.f32.mrb[63].mxu1 }
 0xf14   :  { %1905 = vrot.lane.b32.xlu1 %v4242_v25, %s4020_s28 }
 0xf18   :  { %1955 = vrot.lane.b32.xlu1 %v4193_v43, %s4005_s26 }
 0xf1c   :  { %2006 = vrot.lane.b32.xlu1 %v4196_v45, %s4005_s26 }
 0xf20   :  { %2009 = vrot.lane.b32.xlu1 %v4238_v22, %s4005_s26 }
 0xf8e   :  { %v1835_v11 = vpop.xlane.xlu0 %1834 }
 0xf8f   :  { %v1839_v12 = vsub.f32 %v1776_v63, %v1835_v11 }
 0xf90   :  { %v1838_v13 = vpop.xlane.xlu1 %1837 }
 0xf91   :  { %v1841_v14 = vmul.f32 1.442695, %v1839_v12  ;;  %v1840_v15 = vsub.f32 %v1827_v5, %v1838_v13 }
 0xf93   :  { %3834 = vpow2.f32 %v1841_v14  ;;  %v1843_v16 = vmul.f32 1.442695, %v1840_v15  ;;  %v833_v15 = vpack.c.bf16 %v4301_v37, %v4301_v37  ;;  %v1730_v37 = vpack.c.bf16 %v4463_v59, %v4463_v59 }
 0xf94   :  { %v1906_v17 = vpop.permute.xlu1 %1905 }
 0xf95   :  { %3836 = vpow2.f32 %v1843_v16  ;;  %v1911_v18 = vsel %vm517_vm2, %v1906_v17, 0  ;;  %v834_v16 = vpack.c.bf16 %v4303_v42, %v4303_v42  ;;  %v1058_v17 = vpack.c.bf16 %v4343_v40, %v4343_v40 }
 0xf96   :  { %3595 = vmatpush3.bf16.msra.mxu1 %v1911_v18  ;;  %v1282_v18 = vpack.c.bf16 %v4383_v46, %v4383_v46 }
 0xf97   :  { %3606 = vmatprep.subr.bf16.mxu1 %v4014_v1 }
 0xf98   :  { %v1956_v24 = vpop.permute.xlu1 %1955 }
 0xf99   :  { %v1957_v34 = vrot.slane %v1956_v24, 4 }
 0xf9c   :  { %v2007_v32 = vpop.permute.xlu1 %2006 }
 0xf9d   :  { %v3835_v43 = vpop.eup %3834  ;;  %v2008_v47 = vrot.slane %v2007_v32, 4  ;;  %v1729_v32 = vpack.c.bf16 %v4461_v54, %v4461_v54 }
 0xf9e   :  { %v1845_v45 = vsel %vm489_vm3, %v3835_v43, 0.0 }
 0xf9f   :  { %v3837_v19 = vpop.eup %3836  ;;  %1846 = vadd.xlane.f32.xlu0 %v1845_v45  ;;  %v2015_v52 = vsel %vm395_vm1, %v2008_v47, 0 }
 0xfa0   :  { %v1848_v22 = vsel %vm489_vm3, %v3837_v19, 0.0  ;;  %v2010_v57 = vpop.permute.xlu1 %2009 }
 0xfa3   :  { %1849 = vadd.xlane.f32.xlu0 %v1848_v22 }
 0xfb9   :  { %1857 = vrot.lane.b32.xlu0 %v4215_v56, %s4020_s28 }
 0xfbd   :  { %1958 = vrot.lane.b32.xlu0 %v4232_v21, %s4005_s26  ;;  %v1964_v21 = vsel %vm395_vm1, %v1957_v34, 0 }
0x102c   :  { %v1847_v20 = vpop.xlane.xlu0 %1846 }
0x102d   :  { %3838 = vrcp.f32 %v1847_v20 }
0x1030   :  { %v1850_v23 = vpop.xlane.xlu0 %1849 }
0x1031   :  { %3840 = vrcp.f32 %v1850_v23 }
0x1034   :  { %v1858_v26 = vpop.permute.xlu0 %1857 }
0x1035   :  { %v1863_v27 = vsel %vm517_vm2, %v1858_v26, 0 }
0x1036   :  { %3589 = vmatpush3.bf16.msra.mxu0 %v1863_v27  ;;  %v1057_v27 = vpack.c.bf16 %v4341_v35, %v4341_v35 }
0x1037   :  { %v3839_v28 = vpop.eup %3838  ;;  %3600 = vmatprep.subr.bf16.mxu0 %v4014_v1 }
0x1038   :  { %v1853_v29 = vmul.f32 %v3839_v28, %v3835_v43  ;;  %v1959_v55 = vpop.permute.xlu0 %1958  ;;  %v1281_v28 = vpack.c.bf16 %v4381_v36, %v4381_v36 }
0x103a   :  { %v1855_v38 = vpack.c.bf16 %v1853_v29, %v1853_v29  ;;  %v1505_v29 = vpack.c.bf16 %v4421_v44, %v4421_v44 }
0x103b   :  { %v3841_v39 = vpop.eup %3840 }
0x103c   :  { %v1854_v48 = vmul.f32 %v3841_v39, %v3837_v19  ;;  %3591 = vmatmul.mubr.msk.bf16.vlgmr.msra.gmra.mrb[48].mxu0 %vm489_vm3, %v1855_v38 }
0x103d   :  { %3602 = vmatprep.mubr.msk.bf16.mxu0 %vm4015_vm0, %v4014_v1 }
0x103e   :  { %v1856_v49 = vpack.c.bf16 %v1854_v48, %v1854_v48 }
0x103f   :  { %3601 = vmatpush3.bf16.xpose.msra.mxu0 %v1964_v21 }
0x1040   :  { %3597 = vmatmul.mubr.msk.bf16.vlgmr.msra.gmra.mrb[64].mxu1 %vm489_vm3, %v1856_v49  ;;  %3612 = vmatprep.subr.bf16.mxu0 %v4014_v1  ;;  %v3698_v49 = vld [vmem:[#allocation7] sm:$0xff]  }
0x1041   :  { %3607 = vmatpush3.bf16.xpose.msra.mxu1 %v2015_v52  ;;  %3608 = vmatprep.mubr.msk.bf16.mxu1 %vm4015_vm0, %v4014_v1  ;;  %v3699_v52 = vld [vmem:[#allocation7 + $0x8] sm:$0xff]  }
0x1042   :  { %3618 = vmatprep.subr.bf16.mxu1 %v4014_v1 }
0x1046   :  { %3603 = vmatmul.mubr.msk.bf16.vlgmr.msra.gmra.mrb[52].mxu0 %vm395_vm1, %v1959_v55  ;;  %v3700_v55 = vld [vmem:[#allocation7 + $0x10] sm:$0xff]  }
0x1047   :  { %3614 = vmatprep.mubr.msk.bf16.mxu0 %vm4015_vm0, %v4014_v1 }
0x1048   :  { %3609 = vmatmul.mubr.msk.bf16.vlgmr.msra.gmra.mrb[68].mxu1 %vm395_vm1, %v2010_v57  ;;  %v3701_v57 = vld [vmem:[#allocation7 + $0x18] sm:$0xff]  }
0x1049   :  { %3620 = vmatprep.mubr.msk.bf16.mxu1 %vm4015_vm0, %v4014_v1 }
0x110f   :  { %v1899_v58 = vpop.f32.mrb[48].mxu0 }
0x1110   :  { %v3592_v60 = vpop.f32.mrb[49].mxu0 }
0x1111   :  { %v1902_v61 = vpop.f32.mrb[50].mxu0  ;;  %v3703_v60 = vld [vmem:[#allocation7 + $0x28] sm:$0xff]  }
0x1112   :  { %v3593_v62 = vpop.f32.mrb[51].mxu0  ;;  %v3704_v61 = vld [vmem:[#allocation7 + $0x30] sm:$0xff]  }
0x1113   :  { %v1947_v63 = vpop.f32.mrb[64].mxu1  ;;  %v3705_v62 = vld [vmem:[#allocation7 + $0x38] sm:$0xff]  }
0x1114   :  { %v3598_v2 = vpop.f32.mrb[65].mxu1  ;;  %v1954_v42 = vpack.c.bf16 %v1947_v63, %v1947_v63 }
0x1115   :  { %v1950_v3 = vpop.f32.mrb[66].mxu1 }
0x1116   :  { %v3599_v4 = vpop.f32.mrb[67].mxu1 }
0x1119   :  { %v2000_v5 = vpop.f32.mrb[52].mxu0 }
0x111a   :  { %v3604_v6 = vpop.f32.mrb[53].mxu0  ;;  %v2057_v7 = vsel %vm489_vm3, %v2000_v5, -inf }
0x111b   :  { %2058 = vmax.xlane.f32.xlu0 %v2057_v7  ;;  %v2003_v8 = vpop.f32.mrb[54].mxu0  ;;  %v2051_v9 = vpop.f32.mrb[68].mxu1 }
0x111c   :  { %v3605_v10 = vpop.f32.mrb[55].mxu0  ;;  %v3610_v11 = vpop.f32.mrb[69].mxu1  ;;  %v2060_v12 = vsel %vm489_vm3, %v2051_v9, -inf }
0x111d   :  { %2061 = vmax.xlane.f32.xlu1 %v2060_v12  ;;  %v2054_v13 = vpop.f32.mrb[70].mxu1 }
0x111e   :  { %v3611_v14 = vpop.f32.mrb[71].mxu1 }
0x112e   :  { %2129 = vrot.lane.b32.xlu1 %v4242_v25, %s4005_s26  ;;  %v1506_v25 = vpack.c.bf16 %v4423_v51, %v4423_v51 }
0x1132   :  { %2181 = vrot.lane.b32.xlu1 %v833_v15, %s4005_s26 }
0x1136   :  { %2183 = vrot.lane.b32.xlu1 %v834_v16, %s4005_s26 }
0x113a   :  { %2189 = vrot.lane.b32.xlu1 %v1058_v17, %s4020_s28 }
0x113e   :  { %2195 = vrot.lane.b32.xlu1 %v1282_v18, %s4019_s27 }
0x1142   :  { %2201 = vrot.lane.b32.xlu1 %v1506_v25, %s4010_s0 }
0x1146   :  { %2207 = vrot.lane.b32.xlu1 %v1730_v37, %s4018_s19  ;;  %v607_v37 = vpack.c.bf16 %v4261_v41, %v4261_v41 }
0x114a   :  { %2213 = vrot.lane.b32.xlu1 %v1954_v42, %s4017_s25  ;;  %v608_v42 = vpack.c.bf16 %v4264_v53, %v4264_v53 }
0x11a8   :  { %v2059_v40 = vpop.xlane.xlu0 %2058 }
0x11a9   :  { %v2063_v43 = vsub.f32 %v2000_v5, %v2059_v40 }
0x11aa   :  { %v2062_v45 = vpop.xlane.xlu1 %2061 }
0x11ab   :  { %v2065_v19 = vmul.f32 1.442695, %v2063_v43  ;;  %v2064_v46 = vsub.f32 %v2051_v9, %v2062_v45 }
0x11ad   :  { %3842 = vpow2.f32 %v2065_v19  ;;  %v2067_v22 = vmul.f32 1.442695, %v2064_v46 }
0x11ae   :  { %v2130_v20 = vpop.permute.xlu1 %2129 }
0x11af   :  { %3844 = vpow2.f32 %v2067_v22  ;;  %v2135_v51 = vsel %vm517_vm2, %v2130_v20, 0 }
0x11b0   :  { %3619 = vmatpush3.bf16.msra.mxu1 %v2135_v51 }
0x11b2   :  { %v2182_v11 = vpop.permute.xlu1 %2181 }
0x11b3   :  { %v2223_v43 = vsel %vm395_vm1, %v607_v37, %v2182_v11  ;;  %v3718_v11 = vld [vmem:[#allocation8 + $0x40] ss:$16 sps:$4 sm:$0xff]   ;;  %v3738_v37 = vld [vmem:[#allocation8 + $0xa4] ss:$16 sps:$4 sm:$0xff]  }
0x11b6   :  { %v2184_v12 = vpop.permute.xlu1 %2183 }
0x11b7   :  { %v3843_v23 = vpop.eup %3842  ;;  %v2226_v45 = vsel %vm395_vm1, %v608_v42, %v2184_v12  ;;  %v3721_v12 = vld [vmem:[#allocation8 + $0x48] ss:$16 sps:$4 sm:$0xff]   ;;  %v3741_v42 = vld [vmem:[#allocation8 + $0xac] ss:$16 sps:$4 sm:$0xff]  }
0x11b8   :  { %v2069_v59 = vsel %vm489_vm3, %v3843_v23, 0.0 }
0x11b9   :  { %v3845_v24 = vpop.eup %3844  ;;  %2070 = vadd.xlane.f32.xlu0 %v2069_v59 }
0x11ba   :  { %v2072_v26 = vsel %vm489_vm3, %v3845_v24, 0.0 }
0x11bd   :  { %2073 = vadd.xlane.f32.xlu0 %v2072_v26 }
0x11d3   :  { %2081 = vrot.lane.b32.xlu0 %v4215_v56, %s4005_s26  ;;  %v1953_v56 = vpack.c.bf16 %v1899_v58, %v1899_v58  ;;  %v3702_v58 = vld [vmem:[#allocation7 + $0x20] sm:$0xff]  }
0x11d7   :  { %2187 = vrot.lane.b32.xlu0 %v1057_v27, %s4020_s28 }
0x11db   :  { %2193 = vrot.lane.b32.xlu0 %v1281_v28, %s4019_s27 }
0x11df   :  { %2199 = vrot.lane.b32.xlu0 %v1505_v29, %s4010_s0 }
0x11e3   :  { %2205 = vrot.lane.b32.xlu0 %v1729_v32, %s4018_s19 }
0x11e7   :  { %2211 = vrot.lane.b32.xlu0 %v1953_v56, %s4017_s25 }
0x1246   :  { %v2071_v35 = vpop.xlane.xlu0 %2070 }
0x1247   :  { %3846 = vrcp.f32 %v2071_v35  ;;  %v3201_v35 = vld [vmem:[%s4630_s4] ss:$0 sm:$0xff] }
0x124a   :  { %v2074_v34 = vpop.xlane.xlu0 %2073 }
0x124b   :  { %3848 = vrcp.f32 %v2074_v34 }
0x124e   :  { %v2082_v36 = vpop.permute.xlu0 %2081 }
0x124f   :  { %v2087_v38 = vsel %vm517_vm2, %v2082_v36, 0 }
0x1250   :  { %3613 = vmatpush3.bf16.msra.mxu0 %v2087_v38 }
0x1251   :  { %v3847_v39 = vpop.eup %3846  ;;  %3624 = vmatprep.subr.bf16.mxu0 %v4014_v1 }
0x1252   :  { %v2077_v44 = vmul.f32 %v3847_v39, %v3843_v23  ;;  %v2188_v13 = vpop.permute.xlu0 %2187 }
0x1253   :  { %v2229_v22 = vsel %vm2227_vm4, %v2223_v43, %v2188_v13  ;;  %v3726_v13 = vld [vmem:[#allocation8 + $0x64] ss:$16 sps:$4 sm:$0xff]   ;;  %v3739_v43 = vld [vmem:[#allocation8 + $0xa8] ss:$16 sps:$4 sm:$0xff]  }
0x1254   :  { %v2079_v47 = vpack.c.bf16 %v2077_v44, %v2077_v44 }
0x1255   :  { %v3849_v48 = vpop.eup %3848 }
0x1256   :  { %v2078_v54 = vmul.f32 %v3849_v48, %v3845_v24  ;;  %3615 = vmatmul.mubr.msk.bf16.vlgmr.msra.gmra.mrb[56].mxu0 %vm489_vm3, %v2079_v47  ;;  %v2194_v14 = vpop.permute.xlu0 %2193  ;;  %v3858_v48 = vld [vmem:[#allocation2] sm:$0xff] }
0x1257   :  { %3640 = vmatprep.mubr.msk.bf16.mxu0 %vm4015_vm0, %v4014_v1  ;;  %3625 = vmatpush3.bf16.msra.mxu0 %v3698_v49  ;;  %v2234_v51 = vsel %vm2232_vm5, %v2229_v22, %v2194_v14  ;;  %v3724_v14 = vld [vmem:[#allocation8 + $0x60] ss:$16 sps:$4 sm:$0xff]   ;;  %v3745_v22 = vld [vmem:[#allocation8 + $0xc8] ss:$16 sps:$4 sm:$0xff]  }
0x1258   :  { %v2080_v21 = vpack.c.bf16 %v2078_v54, %v2078_v54  ;;  %3626 = vmatprep.subr.bf16.mxu0 %v4014_v1 }
0x125a   :  { %3621 = vmatmul.mubr.msk.bf16.vlgmr.msra.gmra.mrb[72].mxu1 %vm489_vm3, %v2080_v21  ;;  %v2200_v16 = vpop.permute.xlu0 %2199  ;;  %v3859_v21 = vld [vmem:[#allocation2 + $0x8] sm:$0xff] }
0x125b   :  { %2665 = vmatprep.mubr.bf16.mxu1 %v4013_v0  ;;  %3627 = vmatpush3.bf16.msra.mxu0 %v3699_v52  ;;  %v2239_v41 = vsel %vm2237_vm6, %v2234_v51, %v2200_v16  ;;  %v3706_v52 = vld [vmem:[#allocation8] ss:$16 sps:$4 sm:$0xff]   ;;  %v3732_v16 = vld [vmem:[#allocation8 + $0x84] ss:$16 sps:$4 sm:$0xff]   ;;  %v3753_v51 = vld [vmem:[#allocation8 + $0xec] ss:$16 sps:$4 sm:$0xff]  }
0x125c   :  { %3628 = vmatprep.subr.bf16.mxu0 %v4014_v1 }
0x125e   :  { %v2206_v18 = vpop.permute.xlu0 %2205 }
0x125f   :  { %3629 = vmatpush3.bf16.msra.mxu0 %v3700_v55  ;;  %v2244_v24 = vsel %vm2242_vm7, %v2239_v41, %v2206_v18  ;;  %v3708_v55 = vld [vmem:[#allocation8 + $0x4] ss:$16 sps:$4 sm:$0xff]   ;;  %v3730_v18 = vld [vmem:[#allocation8 + $0x80] ss:$16 sps:$4 sm:$0xff]   ;;  %v3751_v41 = vld [vmem:[#allocation8 + $0xe8] ss:$16 sps:$4 sm:$0xff]  }
0x1260   :  { %3630 = vmatprep.subr.bf16.mxu0 %v4014_v1  ;;  %2633 = vmatprep.subr.bf16.mxu1 %v3708_v55  ;;  %v3758_v55 = vld [vmem:[#allocation10 + $0x48] sm:$0xff]  }
0x1261   :  { %2634 = vmatpush1.bf16.msra.mxu1 %v3706_v52 }
0x1262   :  { %v2212_v40 = vpop.permute.xlu0 %2211 }
0x1263   :  { %3631 = vmatpush3.bf16.msra.mxu0 %v3701_v57  ;;  %v2249_v27 = vsel %vm2247_vm8, %v2244_v24, %v2212_v40  ;;  %v3709_v57 = vld [vmem:[#allocation8 + $0x8] ss:$16 sps:$4 sm:$0xff]   ;;  %v3736_v40 = vld [vmem:[#allocation8 + $0xa0] ss:$16 sps:$4 sm:$0xff]  }
0x1264   :  { %3632 = vmatprep.subr.bf16.mxu0 %v4014_v1 }
0x1267   :  { %3633 = vmatpush3.bf16.msra.mxu0 %v3702_v58  ;;  %v3714_v58 = vld [vmem:[#allocation8 + $0x24] ss:$16 sps:$4 sm:$0xff]  }
0x1268   :  { %3634 = vmatprep.subr.bf16.mxu0 %v4014_v1  ;;  %2635 = vmatprep.subr.bf16.mxu1 %v3714_v58  ;;  %v3761_v58 = vld [vmem:[#allocation10 + $0x88] sm:$0xff]  }
0x126b   :  { %3635 = vmatpush3.bf16.msra.mxu0 %v3703_v60  ;;  %v3717_v60 = vld [vmem:[#allocation8 + $0x2c] ss:$16 sps:$4 sm:$0xff]  }
0x126c   :  { %3636 = vmatprep.subr.bf16.mxu0 %v4014_v1 }
0x126f   :  { %3637 = vmatpush3.bf16.msra.mxu0 %v3704_v61  ;;  %v3712_v61 = vld [vmem:[#allocation8 + $0x20] ss:$16 sps:$4 sm:$0xff]  }
0x1270   :  { %3638 = vmatprep.subr.bf16.mxu0 %v4014_v1  ;;  %v2190_v1 = vpop.permute.xlu1 %2189  ;;  %2636 = vmatpush1.bf16.msra.mxu1 %v3712_v61  ;;  %v3763_v61 = vld [vmem:[#allocation10 + $0xd0] sm:$0xff]  }
0x1271   :  { %v2231_v19 = vsel %vm2227_vm4, %v2226_v45, %v2190_v1  ;;  %v3729_v1 = vld [vmem:[#allocation8 + $0x6c] ss:$16 sps:$4 sm:$0xff]   ;;  %v3744_v45 = vld [vmem:[#allocation8 + $0xc4] ss:$16 sps:$4 sm:$0xff]  }
0x1273   :  { %3639 = vmatpush3.bf16.msra.mxu0 %v3705_v62  ;;  %v3715_v62 = vld [vmem:[#allocation8 + $0x28] ss:$16 sps:$4 sm:$0xff]  }
0x1274   :  { %v2196_v15 = vpop.permute.xlu1 %2195 }
0x1275   :  { %v2236_v20 = vsel %vm2232_vm5, %v2231_v19, %v2196_v15  ;;  %v3727_v15 = vld [vmem:[#allocation8 + $0x68] ss:$16 sps:$4 sm:$0xff]   ;;  %v3747_v19 = vld [vmem:[#allocation8 + $0xcc] ss:$16 sps:$4 sm:$0xff]  }
0x1278   :  { %v2202_v17 = vpop.permute.xlu1 %2201 }
0x1279   :  { %v2241_v23 = vsel %vm2237_vm6, %v2236_v20, %v2202_v17  ;;  %v3735_v17 = vld [vmem:[#allocation8 + $0x8c] ss:$16 sps:$4 sm:$0xff]   ;;  %v3750_v20 = vld [vmem:[#allocation8 + $0xe4] ss:$16 sps:$4 sm:$0xff]  }
0x127c   :  { %v2208_v25 = vpop.permute.xlu1 %2207 }
0x127d   :  { %v2246_v53 = vsel %vm2242_vm7, %v2241_v23, %v2208_v25  ;;  %v3733_v25 = vld [vmem:[#allocation8 + $0x88] ss:$16 sps:$4 sm:$0xff]   ;;  %v3748_v23 = vld [vmem:[#allocation8 + $0xe0] ss:$16 sps:$4 sm:$0xff]  }
0x1280   :  { %v2214_v46 = vpop.permute.xlu1 %2213 }
0x1281   :  { %v2251_v26 = vsel %vm2247_vm8, %v2246_v53, %v2214_v46  ;;  %v3742_v46 = vld [vmem:[#allocation8 + $0xc0] ss:$16 sps:$4 sm:$0xff]  }
0x1282   :  { %v3755_v53 = vld [vmem:[#allocation10 + $0xc0] sm:$0xff]  }
0x1329   :  { %v2123_v63 = vpop.f32.mrb[56].mxu0 }
0x132a   :  { %v2177_v2 = vpack.c.bf16 %v2123_v63, %v2123_v63  ;;  %v3616_v3 = vpop.f32.mrb[57].mxu0 }
0x132b   :  { %v2126_v4 = vpop.f32.mrb[58].mxu0 }
0x132c   :  { %2217 = vrot.lane.b32.xlu0 %v2177_v2, %s4016_s2  ;;  %v3617_v5 = vpop.f32.mrb[59].mxu0 }
0x132d   :  { %v2171_v6 = vpop.f32.mrb[72].mxu1 }
0x132e   :  { %v2178_v7 = vpack.c.bf16 %v2171_v6, %v2171_v6  ;;  %v3622_v8 = vpop.f32.mrb[73].mxu1 }
0x132f   :  { %v2174_v9 = vpop.f32.mrb[74].mxu1 }
0x1330   :  { %2219 = vrot.lane.b32.xlu1 %v2178_v7, %s4016_s2  ;;  %v3623_v10 = vpop.f32.mrb[75].mxu1  ;;  %v3720_v9 = vld [vmem:[#allocation8 + $0x44] ss:$16 sps:$4 sm:$0xff]  }
0x1331   :  { %v3723_v10 = vld [vmem:[#allocation8 + $0x4c] ss:$16 sps:$4 sm:$0xff]   ;;  %2637 = vmatprep.subr.bf16.mxu1 %v3720_v9  ;;  %v3773_v9 = vld [vmem:[#allocation10 + $0xa0] sm:$0xff]  }
0x1332   :  { %2638 = vmatpush1.bf16.msra.mxu1 %v3718_v11  ;;  %v3775_v11 = vld [vmem:[#allocation10 + $0xe8] sm:$0xff]  }
0x1333   :  { %2639 = vmatprep.subr.bf16.mxu1 %v3726_v13  ;;  %v3777_v13 = vld [vmem:[#allocation10 + $0xa8] sm:$0xff]  }
0x1336   :  { %2640 = vmatpush1.bf16.msra.mxu1 %v3724_v14  ;;  %v3779_v14 = vld [vmem:[#allocation10 + $0xf0] sm:$0xff]  }
0x1337   :  { %2641 = vmatprep.subr.bf16.mxu1 %v3732_v16  ;;  %v3781_v16 = vld [vmem:[#allocation10 + $0xb0] sm:$0xff]  }
0x133a   :  { %2642 = vmatpush1.bf16.msra.mxu1 %v3730_v18  ;;  %v3783_v18 = vld [vmem:[#allocation10 + $0xf8] sm:$0xff]  }
0x133b   :  { %2643 = vmatprep.subr.bf16.mxu1 %v3738_v37  ;;  %v3785_v37 = vld [vmem:[#allocation10 + $0xb8] sm:$0xff]  }
0x133e   :  { %2644 = vmatpush1.bf16.msra.mxu1 %v3736_v40  ;;  %v2467_v40 = vsub.s32 3, %v4177_v30 }
0x133f   :  { %2645 = vmatprep.subr.bf16.mxu1 %v3744_v45 }
0x1342   :  { %2646 = vmatpush1.bf16.msra.mxu1 %v3742_v46 }
0x1343   :  { %2647 = vmatprep.subr.bf16.mxu1 %v3750_v20 }
0x1346   :  { %2648 = vmatpush1.bf16.msra.mxu1 %v3748_v23 }
0x139e   :  { %v2218_v59 = vpop.permute.xlu0 %2217 }
0x139f   :  { %v2254_v29 = vsel %vm2252_vm9, %v2249_v27, %v2218_v59  ;;  %v3754_v59 = vld [vmem:[#allocation10 + $0x40] sm:$0xff]  }
0x13a0   :  { %3368 = vmatprep.subr.bf16.mxu1 %v3754_v59 }
0x13a2   :  { %v2220_v28 = vpop.permute.xlu1 %2219 }
0x13a3   :  { %v2256_v32 = vsel %vm2252_vm9, %v2251_v26, %v2220_v28 }
0x13a4   :  { %v3202_v56 = vcombine.low %v2254_v29, %v2256_v32 }
0x13a6   :  { %3641 = vmatmul.mubr.bf16.vlgmr.msra.gmra.mrb[60].mxu0 %v3202_v56 }
0x13a7   :  { %2708 = vmatprep.mubr.bf16.mxu0 %v4013_v0  ;;  %v3711_v0 = vld [vmem:[#allocation8 + $0xc] ss:$16 sps:$4 sm:$0xff]  }
0x13a8   :  { %2676 = vmatprep.subr.bf16.mxu0 %v3711_v0  ;;  %v3760_v0 = vld [vmem:[#allocation10 + $0x8] sm:$0xff]  }
0x13a9   :  { %2677 = vmatpush1.bf16.msra.mxu0 %v3709_v57  ;;  %v3759_v57 = vld [vmem:[#allocation10 + $0xc8] sm:$0xff]  }
0x13aa   :  { %2678 = vmatprep.subr.bf16.mxu0 %v3717_v60  ;;  %v3762_v60 = vld [vmem:[#allocation10 + $0x50] sm:$0xff]  }
0x13ad   :  { %2679 = vmatpush1.bf16.msra.mxu0 %v3715_v62  ;;  %v3764_v62 = vld [vmem:[#allocation10 + $0x10] sm:$0xff]  }
0x13ae   :  { %2680 = vmatprep.subr.bf16.mxu0 %v3723_v10  ;;  %v3774_v10 = vld [vmem:[#allocation10 + $0x68] sm:$0xff]  }
0x13b1   :  { %2681 = vmatpush1.bf16.msra.mxu0 %v3721_v12  ;;  %v3776_v12 = vld [vmem:[#allocation10 + $0x28] sm:$0xff]  }
0x13b2   :  { %2682 = vmatprep.subr.bf16.mxu0 %v3729_v1  ;;  %v3778_v1 = vld [vmem:[#allocation10 + $0x70] sm:$0xff]  }
0x13b5   :  { %2683 = vmatpush1.bf16.msra.mxu0 %v3727_v15  ;;  %v3780_v15 = vld [vmem:[#allocation10 + $0x30] sm:$0xff]  }
0x13b6   :  { %2684 = vmatprep.subr.bf16.mxu0 %v3735_v17  ;;  %v3782_v17 = vld [vmem:[#allocation10 + $0x78] sm:$0xff]  }
0x13b9   :  { %2685 = vmatpush1.bf16.msra.mxu0 %v3733_v25  ;;  %v3784_v25 = vld [vmem:[#allocation10 + $0x38] sm:$0xff]  }
0x13ba   :  { %2686 = vmatprep.subr.bf16.mxu0 %v3741_v42  ;;  %v2451_v42 = vld [vmem:[%s4632_s6] sm:$0xf] }
0x13bb   :  { %v2464_v45 = vrot.slane %v2451_v42, %v161_v50  ;;  %v2468_v46 = vrot.slane %v2451_v42, %v2467_v40 }
0x13bd   :  { %2687 = vmatpush1.bf16.msra.mxu0 %v3739_v43  ;;  %v2456_v43 = vrot.slane %v2451_v42, %v153_v31 }
0x13be   :  { %2688 = vmatprep.subr.bf16.mxu0 %v3747_v19  ;;  %v2460_v19 = vrot.slane %v2451_v42, %v157_v33 }
0x13c1   :  { %2689 = vmatpush1.bf16.msra.mxu0 %v3745_v22 }
0x13c2   :  { %2690 = vmatprep.subr.bf16.mxu0 %v3753_v51 }
0x13c5   :  { %2691 = vmatpush1.bf16.msra.mxu0 %v3751_v41 }
0x13c6   :  { %3390 = vmatprep.subr.bf16.mxu0 %v3755_v53 }
0x1479   :  { %v2368_v34 = vpop.f32.mrb[60].mxu0 }
0x147a   :  { %v2369_v36 = vadd.f32 %v3201_v35, %v2368_v34  ;;  %v3642_v38 = vpop.f32.mrb[61].mxu0  ;;  %v3211_v34 = vld [vmem:[%s4635_s9] ss:$0 sm:$0xff] }
0x147b   :  { %v2371_v39 = vpop.f32.mrb[62].mxu0 }
0x147c   :  { %v2372_v44 = vadd.f32 %v3201_v35, %v2371_v39  ;;  %v3643_v47 = vpop.f32.mrb[63].mxu0  ;;  %v2375_v54 = vadd.f32 %v3858_v48, %v2369_v36 }
0x147e   :  { %2379 = vadd.xlane.f32.xlu0 %v2375_v54  ;;  %v2376_v49 = vadd.f32 %v3859_v21, %v2372_v44  ;;  %v3212_v44 = vld [vmem:[%s4636_s10] ss:$0 sm:$0xff]  ;;  %v3756_v21 = vld [vmem:[#allocation10] sm:$0xff]  }
0x1480   :  { %2381 = vadd.xlane.f32.xlu1 %v2376_v49 }
0x150b   :  { %v2380_v63 = vpop.xlane.xlu0 %2379 }
0x150c   :  { %v2384_v2 = vmul.f32 0.0078125, %v2380_v63  ;;  %v3765_v63 = vld [vmem:[#allocation10 + $0x90] sm:$0xff]  }
0x150d   :  { %v2382_v3 = vpop.xlane.xlu1 %2381 }
0x150e   :  { %v4568_v4 = vsub.f32 %v2375_v54, %v2384_v2  ;;  %v2385_v5 = vmul.f32 0.0078125, %v2382_v3  ;;  %v3766_v2 = vld [vmem:[#allocation10 + $0x58] sm:$0xff]  }
0x150f   :  { %v3767_v3 = vld [vmem:[#allocation10 + $0xd8] sm:$0xff]  }
0x1510   :  { %v4570_v6 = vsub.f32 %v2376_v49, %v2385_v5  ;;  %v2388_v7 = vmul.f32 %v4568_v4, %v4568_v4  ;;  %v3757_v49 = vld [vmem:[#allocation10 + $0x80] sm:$0xff]   ;;  %v3769_v5 = vld [vmem:[#allocation10 + $0x98] sm:$0xff]  }
0x1512   :  { %2390 = vadd.xlane.f32.xlu0 %v2388_v7  ;;  %v2389_v8 = vmul.f32 %v4570_v6, %v4570_v6  ;;  %v3771_v7 = vld [vmem:[#allocation10 + $0xe0] sm:$0xff]  }
0x1516   :  { %2392 = vadd.xlane.f32.xlu0 %v2389_v8  ;;  %v3772_v8 = vld [vmem:[#allocation10 + $0x20] sm:$0xff]  }
0x159f   :  { %v2391_v24 = vpop.xlane.xlu0 %2390 }
0x15a0   :  { %v2394_v26 = vmul.f32 0.0078125, %v2391_v24 }
0x15a2   :  { %v2396_v27 = vadd.f32 1e-05, %v2394_v26 }
0x15a3   :  { %v2393_v28 = vpop.xlane.xlu0 %2392 }
0x15a4   :  { %3850 = vrsqrt.f32 %v2396_v27  ;;  %v2395_v29 = vmul.f32 0.0078125, %v2393_v28 }
0x15a6   :  { %v2397_v32 = vadd.f32 1e-05, %v2395_v29 }
0x15a8   :  { %3852 = vrsqrt.f32 %v2397_v32 }
0x15ae   :  { %v3851_v56 = vpop.eup %3850 }
0x15af   :  { %v2400_v35 = vmul.f32 %v3851_v56, %v4568_v4  ;;  %v3768_v4 = vld [vmem:[#allocation10 + $0x18] sm:$0xff]  }
0x15b1   :  { %v2408_v39 = vmul.f32 %v3211_v34, %v2400_v35 }
0x15b2   :  { %v3853_v36 = vpop.eup %3852 }
0x15b3   :  { %v2401_v38 = vmul.f32 %v3853_v36, %v4570_v6  ;;  %v4584_v48 = vadd.f32 %v3212_v44, %v2408_v39  ;;  %v3770_v6 = vld [vmem:[#allocation10 + $0x60] sm:$0xff]  }
0x15b5   :  { %v2409_v47 = vmul.f32 %v3211_v34, %v2401_v38 }
0x15b7   :  { %v4586_v54 = vadd.f32 %v3212_v44, %v2409_v47 }
0x15b9   :  { %v2418_v52 = vpack.c.bf16 %v4586_v54, %v4584_v48 }
0x15bb   :  { %2666 = vmatmul.mubr.bf16.vlgmr.msra.gmra.mrb[76].mxu1 %v2418_v52  ;;  %2709 = vmatmul.mubr.bf16.vlgmr.msra.gmra.mrb[64].mxu0 %v2418_v52 }
0x15bc   :  { %3369 = vmatpush3.bf16.msra.mxu1 %v3756_v21  ;;  %3391 = vmatpush3.bf16.msra.mxu0 %v3757_v49 }
0x15bd   :  { %3370 = vmatprep.subr.bf16.mxu1 %v3758_v55  ;;  %3392 = vmatprep.subr.bf16.mxu0 %v3759_v57 }
0x15c0   :  { %3371 = vmatpush3.bf16.msra.mxu1 %v3760_v0  ;;  %3393 = vmatpush3.bf16.msra.mxu0 %v3761_v58  ;;  %v3245_v0 = vld [vmem:[%s4634_s8] ss:$0 sm:$0xff] }
0x15c1   :  { %3372 = vmatprep.subr.bf16.mxu1 %v3762_v60  ;;  %3394 = vmatprep.subr.bf16.mxu0 %v3763_v61 }
0x15c4   :  { %3373 = vmatpush3.bf16.msra.mxu1 %v3764_v62  ;;  %3395 = vmatpush3.bf16.msra.mxu0 %v3765_v63 }
0x15c5   :  { %3374 = vmatprep.subr.bf16.mxu1 %v3766_v2  ;;  %3396 = vmatprep.subr.bf16.mxu0 %v3767_v3 }
0x15c8   :  { %3375 = vmatpush3.bf16.msra.mxu1 %v3768_v4  ;;  %3397 = vmatpush3.bf16.msra.mxu0 %v3769_v5 }
0x15c9   :  { %3376 = vmatprep.subr.bf16.mxu1 %v3770_v6  ;;  %3398 = vmatprep.subr.bf16.mxu0 %v3771_v7 }
0x15cc   :  { %3377 = vmatpush3.bf16.msra.mxu1 %v3772_v8  ;;  %3399 = vmatpush3.bf16.msra.mxu0 %v3773_v9 }
0x15cd   :  { %3378 = vmatprep.subr.bf16.mxu1 %v3774_v10  ;;  %3400 = vmatprep.subr.bf16.mxu0 %v3775_v11 }
0x15d0   :  { %3379 = vmatpush3.bf16.msra.mxu1 %v3776_v12  ;;  %3401 = vmatpush3.bf16.msra.mxu0 %v3777_v13 }
0x15d1   :  { %3380 = vmatprep.subr.bf16.mxu1 %v3778_v1  ;;  %3402 = vmatprep.subr.bf16.mxu0 %v3779_v14 }
0x15d4   :  { %3381 = vmatpush3.bf16.msra.mxu1 %v3780_v15  ;;  %3403 = vmatpush3.bf16.msra.mxu0 %v3781_v16 }
0x15d5   :  { %3382 = vmatprep.subr.bf16.mxu1 %v3782_v17  ;;  %3404 = vmatprep.subr.bf16.mxu0 %v3783_v18 }
0x15d8   :  { %3383 = vmatpush3.bf16.msra.mxu1 %v3784_v25  ;;  %3405 = vmatpush3.bf16.msra.mxu0 %v3785_v37 }
0x168e   :  { %v2667_v22 = vpop.f32.mrb[76].mxu1  ;;  %v2710_v20 = vpop.f32.mrb[64].mxu0 }
0x168f   :  { %v2668_v51 = vadd.f32 %v2667_v22, %v2456_v43  ;;  %v2711_v23 = vadd.f32 %v2710_v20, %v2464_v45  ;;  %v2669_v41 = vpop.f32.mrb[77].mxu1  ;;  %v2712_v59 = vpop.f32.mrb[65].mxu0  ;;  %v3279_v20 = vld [vmem:[%s4638_s12] ss:$0 sm:$0xff] }
0x1690   :  { %v2670_v53 = vadd.f32 %v2669_v41, %v2460_v19  ;;  %v2713_v24 = vadd.f32 %v2712_v59, %v2468_v46  ;;  %v2671_v26 = vpop.f32.mrb[78].mxu1  ;;  %v2714_v27 = vpop.f32.mrb[66].mxu0 }
0x1691   :  { %v2672_v28 = vadd.f32 %v2671_v26, %v2456_v43  ;;  %v2715_v29 = vadd.f32 %v2714_v27, %v2464_v45  ;;  %v2673_v31 = vpop.f32.mrb[79].mxu1  ;;  %v2716_v32 = vpop.f32.mrb[67].mxu0  ;;  %v2719_v35 = vmax.f32 %v2668_v51, 0.0  ;;  %v2721_v30 = vmax.f32 %v2711_v23, 0.0 }
0x1692   :  { %v2674_v56 = vadd.f32 %v2673_v31, %v2460_v19  ;;  %v2717_v50 = vadd.f32 %v2716_v32, %v2468_v46  ;;  %v2720_v36 = vmax.f32 %v2670_v53, 0.0  ;;  %v2722_v38 = vmax.f32 %v2713_v24, 0.0  ;;  %v3278_v19 = vld [vmem:[%s4637_s11] ss:$0 sm:$0xff] }
0x1693   :  { %v2723_v33 = vmax.f32 %v2672_v28, 0.0  ;;  %v2725_v34 = vmax.f32 %v2715_v29, 0.0 }
0x1694   :  { %v2724_v39 = vmax.f32 %v2674_v56, 0.0  ;;  %v2726_v44 = vmax.f32 %v2717_v50, 0.0 }
0x1695   :  { %v2727_v47 = vpack.c.bf16 %v2723_v33, %v2719_v35  ;;  %v2729_v21 = vpack.c.bf16 %v2725_v34, %v2721_v30 }
0x1696   :  { %v2728_v49 = vpack.c.bf16 %v2724_v39, %v2720_v36  ;;  %v2730_v52 = vpack.c.bf16 %v2726_v44, %v2722_v38 }
0x1698   :  { %3026 = vmatprep.mubr.bf16.mxu1 %v2728_v49  ;;  %3067 = vmatprep.mubr.bf16.mxu0 %v2730_v52 }
0x1699   :  { %3027 = vmatmul.mubr.bf16.vlgmr.msra.gmra.mrb[80].mxu1 %v2727_v47  ;;  %3068 = vmatmul.mubr.bf16.vlgmr.msra.gmra.mrb[68].mxu0 %v2729_v21 }
0x176c   :  { %v3384_v55 = vpop.f32.mrb[80].mxu1  ;;  %v3406_v57 = vpop.f32.mrb[68].mxu0 }
0x176d   :  { %v3385_v58 = vpop.f32.mrb[81].mxu1  ;;  %v3407_v60 = vpop.f32.mrb[69].mxu0 }
0x176e   :  { %v3386_v61 = vadd.f32 %v3385_v58, %v3384_v55  ;;  %v3408_v62 = vadd.f32 %v3407_v60, %v3406_v57  ;;  %v3387_v63 = vpop.f32.mrb[82].mxu1  ;;  %v3409_v2 = vpop.f32.mrb[70].mxu0 }
0x176f   :  { %v3388_v3 = vpop.f32.mrb[83].mxu1  ;;  %v3410_v4 = vpop.f32.mrb[71].mxu0 }
0x1770   :  { %v3029_v5 = vadd.f32 %v3386_v61, %v3245_v0  ;;  %v3389_v6 = vadd.f32 %v3388_v3, %v3387_v63  ;;  %v3411_v7 = vadd.f32 %v3410_v4, %v3409_v2 }
0x1772   :  { %v3070_v8 = vadd.f32 %v3408_v62, %v3029_v5  ;;  %v3032_v9 = vadd.f32 %v3389_v6, %v3245_v0 }
0x1774   :  { %v3073_v10 = vadd.f32 %v3411_v7, %v3032_v9  ;;  %v3076_v11 = vadd.f32 %v3070_v8, %v4584_v48 }
0x1776   :  { %3080 = vadd.xlane.f32.xlu0 %v3076_v11  ;;  %v3077_v12 = vadd.f32 %v3073_v10, %v4586_v54 }
0x1778   :  { %3082 = vadd.xlane.f32.xlu1 %v3077_v12 }
0x1803   :  { %v3081_v13 = vpop.xlane.xlu0 %3080 }
0x1804   :  { %v3084_v1 = vmul.f32 0.0078125, %v3081_v13 }
0x1805   :  { %v3083_v14 = vpop.xlane.xlu1 %3082 }
0x1806   :  { %v3086_v15 = vsub.f32 %v3076_v11, %v3084_v1  ;;  %v3085_v16 = vmul.f32 0.0078125, %v3083_v14 }
0x1808   :  { %v3087_v17 = vsub.f32 %v3077_v12, %v3085_v16  ;;  %v3088_v18 = vmul.f32 %v3086_v15, %v3086_v15 }
0x180a   :  { %3090 = vadd.xlane.f32.xlu0 %v3088_v18  ;;  %v3089_v25 = vmul.f32 %v3087_v17, %v3087_v17 }
0x180c   :  { %3092 = vadd.xlane.f32.xlu1 %v3089_v25 }
0x1897   :  { %v3091_v37 = vpop.xlane.xlu0 %3090 }
0x1898   :  { %v3094_v42 = vmul.f32 0.0078125, %v3091_v37 }
0x1899   :  { %v3093_v40 = vpop.xlane.xlu1 %3092 }
0x189a   :  { %v3096_v43 = vadd.f32 1e-05, %v3094_v42  ;;  %v3095_v45 = vmul.f32 0.0078125, %v3093_v40 }
0x189c   :  { %3854 = vrsqrt.f32 %v3096_v43  ;;  %v3097_v48 = vadd.f32 1e-05, %v3095_v45 }
0x189e   :  { %3856 = vrsqrt.f32 %v3097_v48 }
0x18a6   :  { %v3855_v54 = vpop.eup %3854 }
0x18a7   :  { %v3100_v46 = vmul.f32 %v3855_v54, %v3086_v15 }
0x18a8   :  { %v3857_v22 = vpop.eup %3856 }
0x18a9   :  { %v3101_v51 = vmul.f32 %v3857_v22, %v3087_v17  ;;  %v3108_v23 = vmul.f32 %v3278_v19, %v3100_v46 }
0x18ab   :  { %v3109_v41 = vmul.f32 %v3278_v19, %v3101_v51  ;;  %v3116_v59 = vadd.f32 %v3279_v20, %v3108_v23 }
0x18ad   :  { %v3117_v53 = vadd.f32 %v3279_v20, %v3109_v41  ;;  %3118 = vst [vmem:[#allocation11] sm:$0xff] %v3116_v59 }
0x18af   :  { %3119 = vst [vmem:[#allocation11 + $0x8] sm:$0xff] %v3117_v53 }
0x18b0   :  { %3981 = shalt.err (!%p3978_p2)
}
0x18b1   :  { %s3982_s12 = scalar_lea.hbm %s4639_s13, 256 }
0x18b2   :  { %p3983_p3 = scmp.ne.s32.totalorder %s4639_s13, %s3982_s12  ;;  %p3986_p4 = scmp.lt.u32.totalorder %s3982_s12, %s4639_s13 }
0x18b4   :  { %p3988_p5 = pnand %p3986_p4, %p3983_p3 }
0x18b6   :  { %3991 = shalt.err (!%p3988_p5)
}
0x18b7   :  { %3131 = dma.vmem_to_hbm [thread:$0]  %s3126_s21, 256, %s4639_s13, [#allocation4], %s4007_s5, %s4007_s5, %s4008_s23  }
0x18b8   :  { %3998 = dma.done.wait [#allocation4], 256  }
0x18b9   :  { %3999 = vsyncadd [#allocation4], 4294967040 }
0x18ba   :  { %3135 = vsyncpa [#allocation3], 1 }
0x18bb   :  { %3136 = vsyncpa [#allocation6], 1 }
0x18bc   :  { %3137 = vsyncpa [#allocation9], 1 }
0x18bd   :  { %3138 = vsyncpa [#allocation4], 1 }

</bundles_post_ra>
